<compile_context>
chip_gen: v6e
topology: v6e:2x2x1
jax: 0.10.0
libtpu: 0.0.40
codegen_flags: <defaults>
</compile_context>

<pallas_src>
import functools

import jax
import jax.numpy as jnp
from jax.experimental import pallas as pl
from jax.experimental.pallas import tpu as pltpu


def _round_up(x, m):
    return (x + m - 1) // m * m


def _cdiv(a, b):
    return (a + b - 1) // b


def _choose_tile(n_rows, unit, cap):
    """Pick rows-per-tile from a ladder: >=2 tiles when possible (v7x megacore) and
    padding waste <= ~1/8 of the real work."""
    ladder = [t for t in (256, 512, 1024, 2048, 4096) if t <= cap and t % unit == 0]
    if not ladder or n_rows <= ladder[0]:
        return max(unit, min(_round_up(n_rows, unit), _round_up(cap, unit)))
    best = ladder[0]
    for t in ladder:
        n_tiles = _cdiv(n_rows, t)
        pad = n_tiles * t - n_rows
        if n_tiles >= 2 and pad * 8 <= n_rows:
            best = t
    return best


# ---------------------------------------------------------------------------
# Pallas kernel: whole MLP stack for one tile of (lane-packed) points.
# ---------------------------------------------------------------------------
def mlp_feature_kernel(
    p_ref, z_ref,                       # (tileP, G*d_pose_pad) / (tileP, G*d_latent_pad) bf16
    wp_ref, bp_ref,                     # packed lin_in_p: (G*d_pose_pad, G*F) bf16 / (1, G*F) f32
    wz_ref, bz_ref,                     # fused+packed lin_in_z: (G*d_lat, B*G*F) / (1, B*G*F)
    w0_ref, b0_ref, w1_ref, b1_ref,     # packed ResnetBlock fc_0/fc_1: (B, G*F, G*F) / (B, 1, G*F)
    wout_ref, bout_ref,                 # packed [out_feat | out_weight]: (G*F, 2*G*F) / (1, 2*G*F)
    feat_ref, wgt_ref,                  # (tileP, G*F) bf16 each (lane-dense)
    *, block_num, lane_f,
):
    f32 = jnp.float32
    bf16 = jnp.bfloat16

    # p = ReLU(p_enc @ Wp + bp)   (bf16 operands, f32 accumulation / elementwise)
    p = jnp.maximum(
        jnp.dot(p_ref[...], wp_ref[...], preferred_element_type=f32) + bp_ref[...],
        0.0,
    )

    # All lin_in_z heads in one wide matmul; sliced per block at 128-lane boundaries.
    tz_all = jnp.maximum(
        jnp.dot(z_ref[...], wz_ref[...], preferred_element_type=f32) + bz_ref[...],
        0.0,
    )

    # Residual trunk (block_num is small & static -> fully unrolled).
    for i in range(block_num):
        p = p + tz_all[:, i * lane_f:(i + 1) * lane_f]
        # ResnetBlock(d_feature): size_in == size_out -> identity shortcut.
        h = jnp.maximum(
            jnp.dot(p.astype(bf16), w0_ref[i], preferred_element_type=f32) + b0_ref[i],
            0.0,
        )
        res = jnp.dot(h.astype(bf16), w1_ref[i], preferred_element_type=f32) + b1_ref[i]
        p = jnp.maximum(p + res, 0.0)

    # Fused output heads: one (G*F, 2*G*F) matmul; ReLU / sigmoid each on their own
    # lane-dense half, stored to separate lane-dense bf16 outputs.
    y = jnp.dot(p.astype(bf16), wout_ref[...], preferred_element_type=f32) + bout_ref[...]
    feat_ref[...] = jnp.maximum(y[:, :lane_f], 0.0).astype(feat_ref.dtype)
    wgt_ref[...] = jax.nn.sigmoid(y[:, lane_f:]).astype(wgt_ref.dtype)


# ---------------------------------------------------------------------------
# Wrapper
# ---------------------------------------------------------------------------
def mlp_feature_forward(p_enc, z, params, *, block_num, tile_n=4096):
    N, d_pose = p_enc.shape
    d_latent = z.shape[-1]
    d_feature = params["wp"].shape[1]
    f32, bf16 = jnp.float32, jnp.bfloat16

    # ---- block-diagonal lane-packing factor ----------------------------------
    g = 128 // d_feature if (d_feature <= 128 and 128 % d_feature == 0) else 1
    lane_f = g * d_feature                      # 128 when g > 1

    # ---- pad per-point feature dims so packed lane dims land on 128 ----------
    in_unit = (128 // g) if g > 1 else 8
    d_pose_pad = _round_up(d_pose, in_unit)
    d_lat_pad = _round_up(d_latent, in_unit)
    wp = params["wp"]
    if d_pose_pad != d_pose:
        p_enc = jnp.pad(p_enc, ((0, 0), (0, d_pose_pad - d_pose)))
        wp = jnp.pad(wp, ((0, d_pose_pad - d_pose), (0, 0)))
    wz = params["wz"]                           # (B, d_latent, F)
    if d_lat_pad != d_latent:
        z = jnp.pad(z, ((0, 0), (0, d_lat_pad - d_latent)))
        wz = jnp.pad(wz, ((0, 0), (0, d_lat_pad - d_latent), (0, 0)))

    # ---- pick row tile and pad N to a multiple of it --------------------------
    unit = 8 * g
    tile = _choose_tile(N, unit, tile_n)
    n_pad = _round_up(N, tile)
    if n_pad != N:
        p_enc = jnp.pad(p_enc, ((0, n_pad - N), (0, 0)))
        z = jnp.pad(z, ((0, n_pad - N), (0, 0)))

    # ---- pack rows: G consecutive points share one 128-lane row ---------------
    n_pad_p = n_pad // g
    tile_p = tile // g
    p_pk = p_enc.astype(bf16).reshape(n_pad_p, g * d_pose_pad)
    z_pk = z.astype(bf16).reshape(n_pad_p, g * d_lat_pad)

    # ---- block-diagonal weight packing (kron with eye(G)), bias lane-tiling ---
    eye = jnp.eye(g, dtype=f32)
    kron = lambda w: jnp.kron(eye, w)
    tile_b = lambda b: jnp.tile(b, (1, g))

    wp_pk = kron(wp)
    bp_pk = tile_b(params["bp"])
    wz_pk = jnp.concatenate([kron(wz[i]) for i in range(block_num)], axis=1)
    bz_pk = jnp.concatenate([tile_b(params["bz"][i]) for i in range(block_num)], axis=1)
    w0_pk = jnp.stack([kron(params["w0"][i]) for i in range(block_num)])
    b0_pk = jnp.tile(params["b0"], (1, 1, g))
    w1_pk = jnp.stack([kron(params["w1"][i]) for i in range(block_num)])
    b1_pk = jnp.tile(params["b1"], (1, 1, g))
    wout_pk = jnp.concatenate([kron(params["wf"]), kron(params["ww"])], axis=1)
    bout_pk = jnp.concatenate([tile_b(params["bf"]), tile_b(params["bw"])], axis=1)

    # bf16 operands for the MXU; biases stay f32 (added to f32 accumulators).
    weight_args = [
        wp_pk.astype(bf16), bp_pk.astype(f32),
        wz_pk.astype(bf16), bz_pk.astype(f32),
        w0_pk.astype(bf16), b0_pk.astype(f32),
        w1_pk.astype(bf16), b1_pk.astype(f32),
        wout_pk.astype(bf16), bout_pk.astype(f32),
    ]

    def full_spec(arr):
        nd = arr.ndim
        return pl.BlockSpec(arr.shape, lambda i, _nd=nd: (0,) * _nd)

    row_spec = lambda d: pl.BlockSpec((tile_p, d), lambda i: (i, 0))

    kernel = functools.partial(
        mlp_feature_kernel, block_num=block_num, lane_f=lane_f)

    feat_pk, wgt_pk = pl.pallas_call(
        kernel,
        out_shape=(jax.ShapeDtypeStruct((n_pad_p, lane_f), bf16),
                   jax.ShapeDtypeStruct((n_pad_p, lane_f), bf16)),
        grid_spec=pltpu.PrefetchScalarGridSpec(
            num_scalar_prefetch=0,
            grid=(n_pad_p // tile_p,),
            in_specs=[row_spec(g * d_pose_pad), row_spec(g * d_lat_pad)]
            + [full_spec(a) for a in weight_args],
            out_specs=[pl.BlockSpec((tile_p, lane_f), lambda i: (i, 0)),
                       pl.BlockSpec((tile_p, lane_f), lambda i: (i, 0))],
        ),
        compiler_params=pltpu.CompilerParams(
            dimension_semantics=("parallel",)),  # independent row tiles -> megacore
    )(p_pk, z_pk, *weight_args)

    # Unpack: each packed row holds G consecutive points, F lanes each.
    out = feat_pk.reshape(n_pad, d_feature)[:N]
    wgt = wgt_pk.reshape(n_pad, d_feature)[:N]
    return out, wgt


# ---------------------------------------------------------------------------
# Parameter init (deterministic, mirrors the PyTorch shapes / init intent)
# ---------------------------------------------------------------------------
def kaiming_normal_t(key, fan_in, fan_out):
    # kaiming_normal_(a=0, mode='fan_in') -> std = sqrt(2 / fan_in); stored transposed.
    std = (2.0 / fan_in) ** 0.5
    return std * jax.random.normal(key, (fan_in, fan_out), dtype=jnp.float32)


def init_params(key, d_pose, d_latent, d_feature, block_num):
    keys = jax.random.split(key, 4 + 2 * block_num)
    p = {}
    p["wp"] = kaiming_normal_t(keys[0], d_pose, d_feature)
    p["bp"] = jnp.zeros((1, d_feature), jnp.float32)
    p["wf"] = kaiming_normal_t(keys[1], d_feature, d_feature)
    p["bf"] = jnp.zeros((1, d_feature), jnp.float32)
    # out_weight keeps PyTorch's default Linear init (uniform, deterministic here).
    bound = (1.0 / d_feature) ** 0.5
    p["ww"] = jax.random.uniform(
        keys[2], (d_feature, d_feature), jnp.float32, -bound, bound
    )
    p["bw"] = jax.random.uniform(keys[3], (1, d_feature), jnp.float32, -bound, bound)

    wz, w0 = [], []
    for i in range(block_num):
        wz.append(kaiming_normal_t(keys[4 + 2 * i], d_latent, d_feature))
        w0.append(kaiming_normal_t(keys[5 + 2 * i], d_feature, d_feature))
    p["wz"] = jnp.stack(wz)                                              # (B, L, F)
    p["bz"] = jnp.zeros((block_num, 1, d_feature), jnp.float32)
    p["w0"] = jnp.stack(w0)                                              # (B, F, F)
    p["b0"] = jnp.zeros((block_num, 1, d_feature), jnp.float32)
    p["w1"] = jnp.zeros((block_num, d_feature, d_feature), jnp.float32)  # fc_1 zero-init
    p["b1"] = jnp.zeros((block_num, 1, d_feature), jnp.float32)
    return p


# ---------------------------------------------------------------------------
# Positional encoding (glue, elementwise) — NeRF-style with include-input.
# ---------------------------------------------------------------------------
def positional_encoding(x3, num_freqs=4):
    freqs = (2.0 ** jnp.arange(num_freqs, dtype=jnp.float32)) * jnp.pi  # (K,)
    scaled = x3[..., None, :] * freqs[:, None]                          # (N, K, 3)
    enc = jnp.concatenate(
        [x3, jnp.sin(scaled).reshape(x3.shape[0], -1),
         jnp.cos(scaled).reshape(x3.shape[0], -1)], axis=-1
    )
    return enc  # (N, 3 + 6*K)


# ---------------------------------------------------------------------------
# Pure-JAX reference (mirrors the kernel's bf16-operand / f32-accumulate math)
# ---------------------------------------------------------------------------
def reference_forward(p_enc, z, prm, block_num):
    bf16 = jnp.bfloat16

    def mm(a, w):
        return jnp.dot(a.astype(bf16), w.astype(bf16),
                       preferred_element_type=jnp.float32)

    p = jnp.maximum(mm(p_enc, prm["wp"]) + prm["bp"], 0.0)
    for i in range(block_num):
        tz = jnp.maximum(mm(z, prm["wz"][i]) + prm["bz"][i], 0.0)
        p = p + tz
        res = jnp.maximum(mm(p, prm["w0"][i]) + prm["b0"][i], 0.0)
        res = mm(res, prm["w1"][i]) + prm["b1"][i]
        p = jnp.maximum(p + res, 0.0)
    out = jnp.maximum(mm(p, prm["wf"]) + prm["bf"], 0.0)
    wgt = jax.nn.sigmoid(mm(p, prm["ww"]) + prm["bw"])
    return out, wgt


if __name__ == "__main__":
    N = 256          # number of points (rows)
    d_latent = 32
    d_feature = 32
    block_num = 2
    num_freqs = 4
    use_view = True

    key = jax.random.PRNGKey(0)
    kx, kz, kp, kw1, kb1 = jax.random.split(key, 5)
    x = jax.random.normal(kx, (N, 6), dtype=jnp.float32)       # 3 pos + 3 view
    z = jax.random.normal(kz, (N, d_latent), dtype=jnp.float32)

    # positional encoding + optional view-dir concat (matches forward() glue)
    p_enc = positional_encoding(x[..., :3], num_freqs)
    if use_view:
        p_enc = jnp.concatenate([p_enc, x[..., 3:]], axis=-1)
    p_enc = p_enc.astype(jnp.float32)
    d_pose = p_enc.shape[-1]                                    # 3 + 6*4 + 3 = 30

    params = init_params(kp, d_pose, d_latent, d_feature, block_num)
    # PyTorch zero-inits fc_1.weight; override with small random values here so the
    # correctness check actually exercises the w1/b1 path (test-only coverage tweak).
    params["w1"] = 0.1 * jax.random.normal(
        kw1, (block_num, d_feature, d_feature), dtype=jnp.float32)
    params["b1"] = 0.1 * jax.random.normal(
        kb1, (block_num, 1, d_feature), dtype=jnp.float32)

    out, wgt = mlp_feature_forward(p_enc, z, params, block_num=block_num)
    out, wgt = jax.block_until_ready((out, wgt))
    out = out.astype(jnp.float32)
    wgt = wgt.astype(jnp.float32)

    ref_out, ref_wgt = reference_forward(p_enc, z, params, block_num)
    # bf16 output writeback -> loosened tolerance vs. the f32 reference.
    assert jnp.allclose(out, ref_out, atol=1e-2, rtol=1e-2), \
        float(jnp.max(jnp.abs(out - ref_out)))
    assert jnp.allclose(wgt, ref_wgt, atol=1e-2, rtol=1e-2), \
        float(jnp.max(jnp.abs(wgt - ref_wgt)))

    print("KERNEL_OK")
</pallas_src>

<mosaic_0001>
module attributes {stable_mosaic.version = 11 : i64} {
  func.func @mlp_feature_kernel(%arg0: i32, %arg1: memref<64x128xbf16, #tpu.memory_space<vmem>>, %arg2: memref<64x128xbf16, #tpu.memory_space<vmem>>, %arg3: memref<128x128xbf16, #tpu.memory_space<vmem>>, %arg4: memref<1x128xf32, #tpu.memory_space<vmem>>, %arg5: memref<128x256xbf16, #tpu.memory_space<vmem>>, %arg6: memref<1x256xf32, #tpu.memory_space<vmem>>, %arg7: memref<2x128x128xbf16, #tpu.memory_space<vmem>>, %arg8: memref<2x1x128xf32, #tpu.memory_space<vmem>>, %arg9: memref<2x128x128xbf16, #tpu.memory_space<vmem>>, %arg10: memref<2x1x128xf32, #tpu.memory_space<vmem>>, %arg11: memref<128x256xbf16, #tpu.memory_space<vmem>>, %arg12: memref<1x256xf32, #tpu.memory_space<vmem>>, %arg13: memref<64x128xbf16, #tpu.memory_space<vmem>>, %arg14: memref<64x128xbf16, #tpu.memory_space<vmem>>) attributes {dimension_semantics = [#tpu.dimension_semantics<parallel>], iteration_bounds = array<i64: 1>, scalar_prefetch = 0 : i64, scratch_operands = 0 : i64, tpu.core_type = #tpu.core_type<tc>, window_params = [{transform_indices = @transform_0, window_bounds = array<i64: 64, 128>}, {transform_indices = @transform_1, window_bounds = array<i64: 64, 128>}, {pipeline_mode = #tpu.pipeline_mode<synchronous>, transform_indices = @transform_2, window_bounds = array<i64: 128, 128>}, {pipeline_mode = #tpu.pipeline_mode<synchronous>, transform_indices = @transform_3, window_bounds = array<i64: 1, 128>}, {pipeline_mode = #tpu.pipeline_mode<synchronous>, transform_indices = @transform_4, window_bounds = array<i64: 128, 256>}, {pipeline_mode = #tpu.pipeline_mode<synchronous>, transform_indices = @transform_5, window_bounds = array<i64: 1, 256>}, {pipeline_mode = #tpu.pipeline_mode<synchronous>, transform_indices = @transform_6, window_bounds = array<i64: 2, 128, 128>}, {pipeline_mode = #tpu.pipeline_mode<synchronous>, transform_indices = @transform_7, window_bounds = array<i64: 2, 1, 128>}, {pipeline_mode = #tpu.pipeline_mode<synchronous>, transform_indices = @transform_8, window_bounds = array<i64: 2, 128, 128>}, {pipeline_mode = #tpu.pipeline_mode<synchronous>, transform_indices = @transform_9, window_bounds = array<i64: 2, 1, 128>}, {pipeline_mode = #tpu.pipeline_mode<synchronous>, transform_indices = @transform_10, window_bounds = array<i64: 128, 256>}, {pipeline_mode = #tpu.pipeline_mode<synchronous>, transform_indices = @transform_11, window_bounds = array<i64: 1, 256>}, {transform_indices = @transform_12, window_bounds = array<i64: 64, 128>}, {transform_indices = @transform_13, window_bounds = array<i64: 64, 128>}]} {
    %c0 = arith.constant 0 : index
    %c0_0 = arith.constant 0 : index
    %0 = vector.load %arg1[%c0, %c0_0] : memref<64x128xbf16, #tpu.memory_space<vmem>>, vector<64x128xbf16>
    %c0_1 = arith.constant 0 : index
    %c0_2 = arith.constant 0 : index
    %1 = vector.load %arg3[%c0_1, %c0_2] : memref<128x128xbf16, #tpu.memory_space<vmem>>, vector<128x128xbf16>
    %cst = arith.constant dense<0.000000e+00> : vector<64x128xf32>
    %2 = tpu.matmul %0, %1, %cst {dimension_numbers = #tpu.dot_dimension_numbers<[1], [0], [0], [1], [0, 0, 1, 1], [], []>} : vector<64x128xbf16>, vector<128x128xbf16>, vector<64x128xf32> -> vector<64x128xf32>
    %c0_3 = arith.constant 0 : index
    %c0_4 = arith.constant 0 : index
    %3 = vector.load %arg4[%c0_3, %c0_4] : memref<1x128xf32, #tpu.memory_space<vmem>>, vector<1x128xf32>
    %4 = vector.broadcast %3 : vector<1x128xf32> to vector<64x128xf32>
    %5 = arith.addf %2, %4 : vector<64x128xf32>
    %cst_5 = arith.constant 0.000000e+00 : f32
    %6 = vector.broadcast %cst_5 : f32 to vector<64x128xf32>
    %7 = arith.maximumf %5, %6 : vector<64x128xf32>
    %c0_6 = arith.constant 0 : index
    %c0_7 = arith.constant 0 : index
    %8 = vector.load %arg2[%c0_6, %c0_7] : memref<64x128xbf16, #tpu.memory_space<vmem>>, vector<64x128xbf16>
    %c0_8 = arith.constant 0 : index
    %c0_9 = arith.constant 0 : index
    %9 = vector.load %arg5[%c0_8, %c0_9] : memref<128x256xbf16, #tpu.memory_space<vmem>>, vector<128x256xbf16>
    %cst_10 = arith.constant dense<0.000000e+00> : vector<64x256xf32>
    %10 = tpu.matmul %8, %9, %cst_10 {dimension_numbers = #tpu.dot_dimension_numbers<[1], [0], [0], [1], [0, 0, 1, 1], [], []>} : vector<64x128xbf16>, vector<128x256xbf16>, vector<64x256xf32> -> vector<64x256xf32>
    %c0_11 = arith.constant 0 : index
    %c0_12 = arith.constant 0 : index
    %11 = vector.load %arg6[%c0_11, %c0_12] : memref<1x256xf32, #tpu.memory_space<vmem>>, vector<1x256xf32>
    %12 = vector.broadcast %11 : vector<1x256xf32> to vector<64x256xf32>
    %13 = arith.addf %10, %12 : vector<64x256xf32>
    %cst_13 = arith.constant 0.000000e+00 : f32
    %14 = vector.broadcast %cst_13 : f32 to vector<64x256xf32>
    %15 = arith.maximumf %13, %14 : vector<64x256xf32>
    %16 = vector.extract_strided_slice %15 {offsets = [0, 0], sizes = [64, 128], strides = [1, 1]} : vector<64x256xf32> to vector<64x128xf32>
    %17 = arith.addf %7, %16 : vector<64x128xf32>
    %18 = arith.truncf %17 : vector<64x128xf32> to vector<64x128xbf16>
    %c0_14 = arith.constant 0 : index
    %c0_15 = arith.constant 0 : index
    %c0_16 = arith.constant 0 : index
    %19 = vector.load %arg7[%c0_14, %c0_15, %c0_16] : memref<2x128x128xbf16, #tpu.memory_space<vmem>>, vector<1x128x128xbf16>
    %20 = vector.shape_cast %19 : vector<1x128x128xbf16> to vector<128x128xbf16>
    %cst_17 = arith.constant dense<0.000000e+00> : vector<64x128xf32>
    %21 = tpu.matmul %18, %20, %cst_17 {dimension_numbers = #tpu.dot_dimension_numbers<[1], [0], [0], [1], [0, 0, 1, 1], [], []>} : vector<64x128xbf16>, vector<128x128xbf16>, vector<64x128xf32> -> vector<64x128xf32>
    %c0_18 = arith.constant 0 : index
    %c0_19 = arith.constant 0 : index
    %c0_20 = arith.constant 0 : index
    %22 = vector.load %arg8[%c0_18, %c0_19, %c0_20] : memref<2x1x128xf32, #tpu.memory_space<vmem>>, vector<1x1x128xf32>
    %23 = vector.shape_cast %22 : vector<1x1x128xf32> to vector<1x128xf32>
    %24 = vector.broadcast %23 : vector<1x128xf32> to vector<64x128xf32>
    %25 = arith.addf %21, %24 : vector<64x128xf32>
    %cst_21 = arith.constant 0.000000e+00 : f32
    %26 = vector.broadcast %cst_21 : f32 to vector<64x128xf32>
    %27 = arith.maximumf %25, %26 : vector<64x128xf32>
    %28 = arith.truncf %27 : vector<64x128xf32> to vector<64x128xbf16>
    %c0_22 = arith.constant 0 : index
    %c0_23 = arith.constant 0 : index
    %c0_24 = arith.constant 0 : index
    %29 = vector.load %arg9[%c0_22, %c0_23, %c0_24] : memref<2x128x128xbf16, #tpu.memory_space<vmem>>, vector<1x128x128xbf16>
    %30 = vector.shape_cast %29 : vector<1x128x128xbf16> to vector<128x128xbf16>
    %cst_25 = arith.constant dense<0.000000e+00> : vector<64x128xf32>
    %31 = tpu.matmul %28, %30, %cst_25 {dimension_numbers = #tpu.dot_dimension_numbers<[1], [0], [0], [1], [0, 0, 1, 1], [], []>} : vector<64x128xbf16>, vector<128x128xbf16>, vector<64x128xf32> -> vector<64x128xf32>
    %c0_26 = arith.constant 0 : index
    %c0_27 = arith.constant 0 : index
    %c0_28 = arith.constant 0 : index
    %32 = vector.load %arg10[%c0_26, %c0_27, %c0_28] : memref<2x1x128xf32, #tpu.memory_space<vmem>>, vector<1x1x128xf32>
    %33 = vector.shape_cast %32 : vector<1x1x128xf32> to vector<1x128xf32>
    %34 = vector.broadcast %33 : vector<1x128xf32> to vector<64x128xf32>
    %35 = arith.addf %31, %34 : vector<64x128xf32>
    %36 = arith.addf %17, %35 : vector<64x128xf32>
    %cst_29 = arith.constant 0.000000e+00 : f32
    %37 = vector.broadcast %cst_29 : f32 to vector<64x128xf32>
    %38 = arith.maximumf %36, %37 : vector<64x128xf32>
    %39 = vector.extract_strided_slice %15 {offsets = [0, 128], sizes = [64, 128], strides = [1, 1]} : vector<64x256xf32> to vector<64x128xf32>
    %40 = arith.addf %38, %39 : vector<64x128xf32>
    %41 = arith.truncf %40 : vector<64x128xf32> to vector<64x128xbf16>
    %c1 = arith.constant 1 : index
    %c0_30 = arith.constant 0 : index
    %c0_31 = arith.constant 0 : index
    %42 = vector.load %arg7[%c1, %c0_30, %c0_31] : memref<2x128x128xbf16, #tpu.memory_space<vmem>>, vector<1x128x128xbf16>
    %43 = vector.shape_cast %42 : vector<1x128x128xbf16> to vector<128x128xbf16>
    %cst_32 = arith.constant dense<0.000000e+00> : vector<64x128xf32>
    %44 = tpu.matmul %41, %43, %cst_32 {dimension_numbers = #tpu.dot_dimension_numbers<[1], [0], [0], [1], [0, 0, 1, 1], [], []>} : vector<64x128xbf16>, vector<128x128xbf16>, vector<64x128xf32> -> vector<64x128xf32>
    %c1_33 = arith.constant 1 : index
    %c0_34 = arith.constant 0 : index
    %c0_35 = arith.constant 0 : index
    %45 = vector.load %arg8[%c1_33, %c0_34, %c0_35] : memref<2x1x128xf32, #tpu.memory_space<vmem>>, vector<1x1x128xf32>
    %46 = vector.shape_cast %45 : vector<1x1x128xf32> to vector<1x128xf32>
    %47 = vector.broadcast %46 : vector<1x128xf32> to vector<64x128xf32>
    %48 = arith.addf %44, %47 : vector<64x128xf32>
    %cst_36 = arith.constant 0.000000e+00 : f32
    %49 = vector.broadcast %cst_36 : f32 to vector<64x128xf32>
    %50 = arith.maximumf %48, %49 : vector<64x128xf32>
    %51 = arith.truncf %50 : vector<64x128xf32> to vector<64x128xbf16>
    %c1_37 = arith.constant 1 : index
    %c0_38 = arith.constant 0 : index
    %c0_39 = arith.constant 0 : index
    %52 = vector.load %arg9[%c1_37, %c0_38, %c0_39] : memref<2x128x128xbf16, #tpu.memory_space<vmem>>, vector<1x128x128xbf16>
    %53 = vector.shape_cast %52 : vector<1x128x128xbf16> to vector<128x128xbf16>
    %cst_40 = arith.constant dense<0.000000e+00> : vector<64x128xf32>
    %54 = tpu.matmul %51, %53, %cst_40 {dimension_numbers = #tpu.dot_dimension_numbers<[1], [0], [0], [1], [0, 0, 1, 1], [], []>} : vector<64x128xbf16>, vector<128x128xbf16>, vector<64x128xf32> -> vector<64x128xf32>
    %c1_41 = arith.constant 1 : index
    %c0_42 = arith.constant 0 : index
    %c0_43 = arith.constant 0 : index
    %55 = vector.load %arg10[%c1_41, %c0_42, %c0_43] : memref<2x1x128xf32, #tpu.memory_space<vmem>>, vector<1x1x128xf32>
    %56 = vector.shape_cast %55 : vector<1x1x128xf32> to vector<1x128xf32>
    %57 = vector.broadcast %56 : vector<1x128xf32> to vector<64x128xf32>
    %58 = arith.addf %54, %57 : vector<64x128xf32>
    %59 = arith.addf %40, %58 : vector<64x128xf32>
    %cst_44 = arith.constant 0.000000e+00 : f32
    %60 = vector.broadcast %cst_44 : f32 to vector<64x128xf32>
    %61 = arith.maximumf %59, %60 : vector<64x128xf32>
    %62 = arith.truncf %61 : vector<64x128xf32> to vector<64x128xbf16>
    %c0_45 = arith.constant 0 : index
    %c0_46 = arith.constant 0 : index
    %63 = vector.load %arg11[%c0_45, %c0_46] : memref<128x256xbf16, #tpu.memory_space<vmem>>, vector<128x256xbf16>
    %cst_47 = arith.constant dense<0.000000e+00> : vector<64x256xf32>
    %64 = tpu.matmul %62, %63, %cst_47 {dimension_numbers = #tpu.dot_dimension_numbers<[1], [0], [0], [1], [0, 0, 1, 1], [], []>} : vector<64x128xbf16>, vector<128x256xbf16>, vector<64x256xf32> -> vector<64x256xf32>
    %c0_48 = arith.constant 0 : index
    %c0_49 = arith.constant 0 : index
    %65 = vector.load %arg12[%c0_48, %c0_49] : memref<1x256xf32, #tpu.memory_space<vmem>>, vector<1x256xf32>
    %66 = vector.broadcast %65 : vector<1x256xf32> to vector<64x256xf32>
    %67 = arith.addf %64, %66 : vector<64x256xf32>
    %68 = vector.extract_strided_slice %67 {offsets = [0, 0], sizes = [64, 128], strides = [1, 1]} : vector<64x256xf32> to vector<64x128xf32>
    %cst_50 = arith.constant 0.000000e+00 : f32
    %69 = vector.broadcast %cst_50 : f32 to vector<64x128xf32>
    %70 = arith.maximumf %68, %69 : vector<64x128xf32>
    %71 = arith.truncf %70 : vector<64x128xf32> to vector<64x128xbf16>
    %c0_51 = arith.constant 0 : index
    %c0_52 = arith.constant 0 : index
    %72 = vector.load %arg13[%c0_51, %c0_52] : memref<64x128xbf16, #tpu.memory_space<vmem>>, vector<64x128xbf16>
    tpu.vector_store %arg13[%c0_51, %c0_52], %71 {strides = array<i32>} : memref<64x128xbf16, #tpu.memory_space<vmem>>, vector<64x128xbf16>,
    %73 = vector.extract_strided_slice %67 {offsets = [0, 128], sizes = [64, 128], strides = [1, 1]} : vector<64x256xf32> to vector<64x128xf32>
    %74 = arith.negf %73 : vector<64x128xf32>
    %75 = math.exp %74 : vector<64x128xf32>
    %cst_53 = arith.constant 1.000000e+00 : f32
    %76 = vector.broadcast %cst_53 : f32 to vector<64x128xf32>
    %77 = arith.addf %76, %75 : vector<64x128xf32>
    %78 = arith.divf %76, %77 : vector<64x128xf32>
    %79 = arith.truncf %78 : vector<64x128xf32> to vector<64x128xbf16>
    %c0_54 = arith.constant 0 : index
    %c0_55 = arith.constant 0 : index
    %80 = vector.load %arg14[%c0_54, %c0_55] : memref<64x128xbf16, #tpu.memory_space<vmem>>, vector<64x128xbf16>
    tpu.vector_store %arg14[%c0_54, %c0_55], %79 {strides = array<i32>} : memref<64x128xbf16, #tpu.memory_space<vmem>>, vector<64x128xbf16>,
    return
  }
  func.func @transform_0(%arg0: i32) -> (i32, i32) {
    %c0_i32 = arith.constant 0 : i32
    %c0_i32_0 = arith.constant 0 : i32
    return %arg0, %c0_i32 : i32, i32
  }
  func.func @transform_1(%arg0: i32) -> (i32, i32) {
    %c0_i32 = arith.constant 0 : i32
    %c0_i32_0 = arith.constant 0 : i32
    return %arg0, %c0_i32 : i32, i32
  }
  func.func @transform_2(%arg0: i32) -> (i32, i32) {
    %c0_i32 = arith.constant 0 : i32
    %c0_i32_0 = arith.constant 0 : i32
    %c0_i32_1 = arith.constant 0 : i32
    return %c0_i32, %c0_i32_0 : i32, i32
  }
  func.func @transform_3(%arg0: i32) -> (i32, i32) {
    %c0_i32 = arith.constant 0 : i32
    %c0_i32_0 = arith.constant 0 : i32
    %c0_i32_1 = arith.constant 0 : i32
    return %c0_i32, %c0_i32_0 : i32, i32
  }
  func.func @transform_4(%arg0: i32) -> (i32, i32) {
    %c0_i32 = arith.constant 0 : i32
    %c0_i32_0 = arith.constant 0 : i32
    %c0_i32_1 = arith.constant 0 : i32
    return %c0_i32, %c0_i32_0 : i32, i32
  }
  func.func @transform_5(%arg0: i32) -> (i32, i32) {
    %c0_i32 = arith.constant 0 : i32
    %c0_i32_0 = arith.constant 0 : i32
    %c0_i32_1 = arith.constant 0 : i32
    return %c0_i32, %c0_i32_0 : i32, i32
  }
  func.func @transform_6(%arg0: i32) -> (i32, i32, i32) {
    %c0_i32 = arith.constant 0 : i32
    %c0_i32_0 = arith.constant 0 : i32
    %c0_i32_1 = arith.constant 0 : i32
    %c0_i32_2 = arith.constant 0 : i32
    return %c0_i32, %c0_i32_0, %c0_i32_1 : i32, i32, i32
  }
  func.func @transform_7(%arg0: i32) -> (i32, i32, i32) {
    %c0_i32 = arith.constant 0 : i32
    %c0_i32_0 = arith.constant 0 : i32
    %c0_i32_1 = arith.constant 0 : i32
    %c0_i32_2 = arith.constant 0 : i32
    return %c0_i32, %c0_i32_0, %c0_i32_1 : i32, i32, i32
  }
  func.func @transform_8(%arg0: i32) -> (i32, i32, i32) {
    %c0_i32 = arith.constant 0 : i32
    %c0_i32_0 = arith.constant 0 : i32
    %c0_i32_1 = arith.constant 0 : i32
    %c0_i32_2 = arith.constant 0 : i32
    return %c0_i32, %c0_i32_0, %c0_i32_1 : i32, i32, i32
  }
  func.func @transform_9(%arg0: i32) -> (i32, i32, i32) {
    %c0_i32 = arith.constant 0 : i32
    %c0_i32_0 = arith.constant 0 : i32
    %c0_i32_1 = arith.constant 0 : i32
    %c0_i32_2 = arith.constant 0 : i32
    return %c0_i32, %c0_i32_0, %c0_i32_1 : i32, i32, i32
  }
  func.func @transform_10(%arg0: i32) -> (i32, i32) {
    %c0_i32 = arith.constant 0 : i32
    %c0_i32_0 = arith.constant 0 : i32
    %c0_i32_1 = arith.constant 0 : i32
    return %c0_i32, %c0_i32_0 : i32, i32
  }
  func.func @transform_11(%arg0: i32) -> (i32, i32) {
    %c0_i32 = arith.constant 0 : i32
    %c0_i32_0 = arith.constant 0 : i32
    %c0_i32_1 = arith.constant 0 : i32
    return %c0_i32, %c0_i32_0 : i32, i32
  }
  func.func @transform_12(%arg0: i32) -> (i32, i32) {
    %c0_i32 = arith.constant 0 : i32
    %c0_i32_0 = arith.constant 0 : i32
    return %arg0, %c0_i32 : i32, i32
  }
  func.func @transform_13(%arg0: i32) -> (i32, i32) {
    %c0_i32 = arith.constant 0 : i32
    %c0_i32_0 = arith.constant 0 : i32
    return %arg0, %c0_i32 : i32, i32
  }
}

</mosaic_0001>

<bundles_post_ra>
// kernel: tpu_custom_call.1
= control target key start
LH: loop header
LB: loop body
LE: loop exit
PB: predicated region body
PF: predicated region fallthrough
CT: control target
= control target key end

     0   :  { %19 = vsyncpa [#allocation3], 0  ;;  %s2528_s0 = inlined_call_operand.hbm [shape: bf16[64,128], index: 0, kind: input, shape index: {}]   ;;  %s2529_s1 = inlined_call_operand.hbm [shape: bf16[64,128], index: 1, kind: input, shape index: {}]   ;;  %s2530_s2 = inlined_call_operand.hbm [shape: bf16[128,128], index: 2, kind: input, shape index: {}]   ;;  %s2531_s3 = inlined_call_operand.vmem [shape: f32[1,128], index: 3, kind: input, shape index: {}]   ;;  %s2532_s4 = inlined_call_operand.hbm [shape: bf16[128,256], index: 4, kind: input, shape index: {}]   ;;  %s2533_s5 = inlined_call_operand.vmem [shape: f32[1,256], index: 5, kind: input, shape index: {}]   ;;  %s2534_s6 = inlined_call_operand.hbm [shape: bf16[2,128,128], index: 6, kind: input, shape index: {}]   ;;  %s2535_s7 = inlined_call_operand.vmem [shape: f32[2,1,128], index: 7, kind: input, shape index: {}]   ;;  %s2536_s8 = inlined_call_operand.hbm [shape: bf16[2,128,128], index: 8, kind: input, shape index: {}]   ;;  %s2537_s9 = inlined_call_operand.vmem [shape: f32[2,1,128], index: 9, kind: input, shape index: {}]   ;;  %s2538_s10 = inlined_call_operand.hbm [shape: bf16[128,256], index: 10, kind: input, shape index: {}]   ;;  %s2539_s11 = inlined_call_operand.vmem [shape: f32[1,256], index: 11, kind: input, shape index: {}]   ;;  %s2540_s12 = inlined_call_operand.hbm [shape: bf16[64,128], index: 12, kind: output, shape index: {0}]   ;;  %s2541_s13 = inlined_call_operand.hbm [shape: bf16[64,128], index: 13, kind: output, shape index: {1}]  }
   0x1   :  { %20 = vsyncpa [#allocation6], 0 }
   0x2   :  { %21 = vsyncpa [#allocation9], 0 }
   0x3   :  { %22 = vsyncpa [#allocation12], 0 }
   0x4   :  { %23 = vsyncpa [#allocation4], 0 }
   0x5   :  { %24 = vsyncpa [#allocation16], 0  ;;  %s2218_s25 = smov [#allocation5]   ;;  %s2219_s27 = smov [#allocation8]  }
   0x6   :  { %s42_s26 = sshll.u32 %s2218_s25, 4  ;;  %s68_s28 = sshll.u32 %s2219_s27, 4  ;;  %s43_s26 = int_to_ptr.vmem [resolvable:$true] %s42_s26  ;;  %s69_s28 = int_to_ptr.vmem [resolvable:$true] %s68_s28 }
   0x7   :  { %s2034_s29 = scalar_lea.vmem %s43_s26, 512  ;;  %p2039_p1 = scmp.lt.s32.totalorder %s43_s26, %s43_s26 }
   0x8   :  { %p2035_p0 = scmp.ne.s32.totalorder %s43_s26, %s2034_s29  ;;  %p2040_p2 = scmp.lt.s32.totalorder %s2034_s29, %s2034_s29 }
   0xa   :  { %p2041_p3 = por %p2040_p2, %p2039_p1 }
   0xc   :  { %p2042_p4 = pnand %p2041_p3, %p2035_p0 }
   0xe   :  { %2045 = shalt.err (!%p2042_p4)
}
   0xf   :  { %s2220_s30 = smov 64   ;;  %s2221_s14 = smov 4  }
  0x10   :  { %48 = dma.hbm_to_vmem [thread:$0]  %s2529_s1, 512, %s43_s26, [#allocation6], %s2220_s30, %s2220_s30, %s2221_s14  }
  0x11   :  { %s2054_s17 = scalar_lea.vmem %s69_s28, 2048  ;;  %p2059_p6 = scmp.lt.s32.totalorder %s69_s28, %s69_s28 }
  0x12   :  { %p2055_p5 = scmp.ne.s32.totalorder %s69_s28, %s2054_s17  ;;  %p2060_p7 = scmp.lt.s32.totalorder %s2054_s17, %s2054_s17 }
  0x14   :  { %p2061_p8 = por %p2060_p7, %p2059_p6 }
  0x16   :  { %p2062_p9 = pnand %p2061_p8, %p2055_p5 }
  0x18   :  { %2065 = shalt.err (!%p2062_p9)
}
  0x19   :  { %s2222_s18 = smov 128   ;;  %s2223_s19 = smov 8  }
  0x1a   :  { %74 = dma.hbm_to_vmem [thread:$0]  %s2532_s4, 2048, %s69_s28, [#allocation9], %s2222_s18, %s2222_s18, %s2223_s19  }
  0x1b   :  { %s2224_s22 = smov [#allocation11]   ;;  %s2225_s24 = smov [#allocation2]  }
  0x1c   :  { %s96_s23 = sshll.u32 %s2224_s22, 4  ;;  %s30_s1 = sshll.u32 %s2225_s24, 4  ;;  %s97_s23 = int_to_ptr.vmem [resolvable:$true] %s96_s23  ;;  %s31_s1 = int_to_ptr.vmem [resolvable:$true] %s30_s1 }
  0x1d   :  { %s2074_s25 = scalar_lea.vmem %s97_s23, 2048  ;;  %p2079_p11 = scmp.lt.s32.totalorder %s97_s23, %s97_s23 }
  0x1e   :  { %p2075_p10 = scmp.ne.s32.totalorder %s97_s23, %s2074_s25  ;;  %p2080_p12 = scmp.lt.s32.totalorder %s2074_s25, %s2074_s25 }
  0x20   :  { %p2081_p13 = por %p2080_p12, %p2079_p11 }
  0x22   :  { %p2082_p0 = pnand %p2081_p13, %p2075_p10 }
  0x24   :  { %2085 = shalt.err (!%p2082_p0)
}
  0x25   :  { %102 = dma.hbm_to_vmem [thread:$0]  %s2536_s8, 2048, %s97_s23, [#allocation12], %s2220_s30, %s2220_s30, %s2221_s14  }
  0x26   :  { %s2094_s4 = scalar_lea.vmem %s31_s1, 512  ;;  %p2099_p2 = scmp.lt.s32.totalorder %s31_s1, %s31_s1 }
  0x27   :  { %p2095_p1 = scmp.ne.s32.totalorder %s31_s1, %s2094_s4  ;;  %p2100_p3 = scmp.lt.s32.totalorder %s2094_s4, %s2094_s4 }
  0x29   :  { %p2101_p4 = por %p2100_p3, %p2099_p2 }
  0x2b   :  { %p2102_p5 = pnand %p2101_p4, %p2095_p1 }
  0x2d   :  { %2105 = shalt.err (!%p2102_p5)
}
  0x2e   :  { %36 = dma.hbm_to_vmem [thread:$0]  %s2528_s0, 512, %s31_s1, [#allocation3], %s2220_s30, %s2220_s30, %s2221_s14  }
  0x2f   :  { %s2226_s15 = smov [#allocation7]   ;;  %s2227_s17 = smov [#allocation10]  }
  0x30   :  { %s54_s16 = sshll.u32 %s2226_s15, 4  ;;  %s82_s20 = sshll.u32 %s2227_s17, 4  ;;  %s55_s16 = int_to_ptr.vmem [resolvable:$true] %s54_s16  ;;  %s83_s20 = int_to_ptr.vmem [resolvable:$true] %s82_s20 }
  0x31   :  { %s2114_s8 = scalar_lea.vmem %s55_s16, 1024  ;;  %p2119_p7 = scmp.lt.s32.totalorder %s55_s16, %s55_s16 }
  0x32   :  { %p2115_p6 = scmp.ne.s32.totalorder %s55_s16, %s2114_s8  ;;  %p2120_p8 = scmp.lt.s32.totalorder %s2114_s8, %s2114_s8 }
  0x34   :  { %p2121_p9 = por %p2120_p8, %p2119_p7 }
  0x36   :  { %p2122_p10 = pnand %p2121_p9, %p2115_p6 }
  0x38   :  { %2125 = shalt.err (!%p2122_p10)
}
  0x39   :  { %60 = dma.hbm_to_vmem [thread:$0]  %s2530_s2, 1024, %s55_s16, [#allocation6], %s2220_s30, %s2220_s30, %s2221_s14  }
  0x3a   :  { %s2134_s0 = scalar_lea.vmem %s83_s20, 2048  ;;  %p2139_p12 = scmp.lt.s32.totalorder %s83_s20, %s83_s20 }
  0x3b   :  { %p2135_p11 = scmp.ne.s32.totalorder %s83_s20, %s2134_s0  ;;  %p2140_p13 = scmp.lt.s32.totalorder %s2134_s0, %s2134_s0 }
  0x3d   :  { %p2141_p0 = por %p2140_p13, %p2139_p12 }
  0x3f   :  { %p2142_p1 = pnand %p2141_p0, %p2135_p11 }
  0x41   :  { %2145 = shalt.err (!%p2142_p1)
}
  0x42   :  { %88 = dma.hbm_to_vmem [thread:$0]  %s2534_s6, 2048, %s83_s20, [#allocation9], %s2220_s30, %s2220_s30, %s2221_s14  }
  0x43   :  { %s2228_s1 = smov [#allocation13]  }
  0x44   :  { %s110_s25 = sshll.u32 %s2228_s1, 4  ;;  %s111_s25 = int_to_ptr.vmem [resolvable:$true] %s110_s25 }
  0x45   :  { %s2154_s26 = scalar_lea.vmem %s111_s25, 2048  ;;  %p2159_p3 = scmp.lt.s32.totalorder %s111_s25, %s111_s25 }
  0x46   :  { %p2155_p2 = scmp.ne.s32.totalorder %s111_s25, %s2154_s26  ;;  %p2160_p4 = scmp.lt.s32.totalorder %s2154_s26, %s2154_s26 }
  0x48   :  { %p2161_p5 = por %p2160_p4, %p2159_p3 }
  0x4a   :  { %p2162_p6 = pnand %p2161_p5, %p2155_p2 }
  0x4c   :  { %2165 = shalt.err (!%p2162_p6)
}
  0x4d   :  { %116 = dma.hbm_to_vmem [thread:$0]  %s2538_s10, 2048, %s111_s25, [#allocation12], %s2222_s18, %s2222_s18, %s2223_s19  }
  0x4e   :  { %2206 = dma.done.wait [#allocation3], 512  }
  0x4f   :  { %2207 = vsyncadd [#allocation3], 4294966784 }
  0x50   :  { %2208 = dma.done.wait [#allocation6], 1536  }
  0x51   :  { %2209 = vsyncadd [#allocation6], 4294965760 }
  0x52   :  { %2210 = dma.done.wait [#allocation9], 4096  }
  0x53   :  { %2211 = vsyncadd [#allocation9], 4294963200 }
  0x54   :  { %2212 = dma.done.wait [#allocation12], 4096  }
  0x55   :  { %2213 = vsyncadd [#allocation12], 4294963200  ;;  %v1898_v0 = vld [vmem:[#allocation7 + $0x38] sm:$0xff]   ;;  %v1899_v1 = vld [vmem:[#allocation7 + $0x30] sm:$0xff]   ;;  %v2229_v21 = vmov 0   ;;  %v343_v50 = vlaneseq }
  0x56   :  { %1764 = vmatprep.subr.bf16.mxu1 %v1898_v0  ;;  %v1900_v2 = vld [vmem:[#allocation7 + $0x28] sm:$0xff]   ;;  %v1901_v3 = vld [vmem:[#allocation7 + $0x20] sm:$0xff]   ;;  %v1902_v5 = vld [vmem:[#allocation7 + $0x18] sm:$0xff]  }
  0x57   :  { %1765 = vmatpush3.bf16.msra.mxu1 %v1898_v0  ;;  %v1906_v4 = vld [vmem:[#allocation2] sm:$0xff]   ;;  %v1903_v6 = vld [vmem:[#allocation7 + $0x10] sm:$0xff]   ;;  %v1904_v7 = vld [vmem:[#allocation7 + $0x8] sm:$0xff]   ;;  %v2350_v52 = vshrl.u32 %v343_v50, 7 }
  0x58   :  { %1766 = vmatprep.subr.bf16.mxu1 %v1899_v1  ;;  %1780 = vmatprep.mubr.bf16.mxu1 %v1906_v4  ;;  %v1905_v8 = vld [vmem:[#allocation7] sm:$0xff]   ;;  %v1910_v9 = vld [vmem:[#allocation8 + $0x74] ss:$8 sps:$4 sm:$0xff]   ;;  %v1907_v10 = vld [vmem:[#allocation2 + $0x8] sm:$0xff]  }
  0x59   :  { %v1908_v11 = vld [vmem:[#allocation8 + $0x70] ss:$8 sps:$4 sm:$0xff]   ;;  %v1913_v13 = vld [vmem:[#allocation8 + $0x64] ss:$8 sps:$4 sm:$0xff]   ;;  %v1911_v14 = vld [vmem:[#allocation8 + $0x60] ss:$8 sps:$4 sm:$0xff]  }
  0x5a   :  { %v1923_v12 = vld [vmem:[#allocation2 + $0x10] sm:$0xff]   ;;  %v1924_v16 = vld [vmem:[#allocation2 + $0x18] sm:$0xff]   ;;  %v1919_v18 = vld [vmem:[#allocation8 + $0x44] ss:$8 sps:$4 sm:$0xff]   ;;  %v345_v54 = vsub.s32 0, %v2350_v52  ;;  %v349_v57 = vsub.s32 1, %v2350_v52 }
  0x5b   :  { %1767 = vmatpush3.bf16.msra.mxu1 %v1899_v1  ;;  %v1916_v15 = vld [vmem:[#allocation8 + $0x54] ss:$8 sps:$4 sm:$0xff]   ;;  %v1914_v17 = vld [vmem:[#allocation8 + $0x50] ss:$8 sps:$4 sm:$0xff]   ;;  %v1917_v19 = vld [vmem:[#allocation8 + $0x40] ss:$8 sps:$4 sm:$0xff]  }
  0x5c   :  { %1768 = vmatprep.subr.bf16.mxu1 %v1900_v2  ;;  %v1922_v20 = vld [vmem:[#allocation8 + $0x34] ss:$8 sps:$4 sm:$0xff]   ;;  %v1920_v22 = vld [vmem:[#allocation8 + $0x30] ss:$8 sps:$4 sm:$0xff]   ;;  %v1927_v23 = vld [vmem:[#allocation8 + $0x24] ss:$8 sps:$4 sm:$0xff]  }
  0x5d   :  { %v1925_v24 = vld [vmem:[#allocation8 + $0x20] ss:$8 sps:$4 sm:$0xff]   ;;  %v1930_v25 = vld [vmem:[#allocation8 + $0x14] ss:$8 sps:$4 sm:$0xff]   ;;  %v1928_v26 = vld [vmem:[#allocation8 + $0x10] ss:$8 sps:$4 sm:$0xff]  }
  0x5e   :  { %v1933_v27 = vld [vmem:[#allocation8 + $0x4] ss:$8 sps:$4 sm:$0xff]   ;;  %v1931_v28 = vld [vmem:[#allocation8] ss:$8 sps:$4 sm:$0xff]   ;;  %v1936_v31 = vld [vmem:[#allocation5 + $0x10] sm:$0xff]  }
  0x5f   :  { %1769 = vmatpush3.bf16.msra.mxu1 %v1900_v2  ;;  %v1934_v29 = vld [vmem:[#allocation5] sm:$0xff]   ;;  %v1935_v30 = vld [vmem:[#allocation5 + $0x8] sm:$0xff]   ;;  %v1937_v32 = vld [vmem:[#allocation5 + $0x18] sm:$0xff]  }
  0x60   :  { %1770 = vmatprep.subr.bf16.mxu1 %v1901_v3  ;;  %v1938_v33 = vld [vmem:[#allocation10 + $0x38] sm:$0xff]   ;;  %v1939_v34 = vld [vmem:[#allocation10 + $0x30] sm:$0xff]   ;;  %v1940_v35 = vld [vmem:[#allocation10 + $0x28] sm:$0xff]  }
  0x61   :  { %1788 = vmatprep.subr.bf16.mxu0 %v1938_v33  ;;  %v1941_v36 = vld [vmem:[#allocation10 + $0x20] sm:$0xff]   ;;  %v1942_v37 = vld [vmem:[#allocation10 + $0x18] sm:$0xff]   ;;  %v1943_v38 = vld [vmem:[#allocation10 + $0x10] sm:$0xff]  }
  0x62   :  { %1789 = vmatpush3.bf16.msra.mxu0 %v1938_v33  ;;  %v1944_v39 = vld [vmem:[#allocation10 + $0x8] sm:$0xff]   ;;  %v1945_v40 = vld [vmem:[#allocation10] sm:$0xff]   ;;  %v1946_v41 = vld [vmem:[#allocation11 + $0x38] sm:$0xff]  }
  0x63   :  { %1771 = vmatpush3.bf16.msra.mxu1 %v1901_v3  ;;  %1790 = vmatprep.subr.bf16.mxu0 %v1939_v34  ;;  %v1947_v42 = vld [vmem:[#allocation11 + $0x30] sm:$0xff]   ;;  %v1948_v43 = vld [vmem:[#allocation11 + $0x28] sm:$0xff]   ;;  %v1949_v44 = vld [vmem:[#allocation11 + $0x20] sm:$0xff]  }
  0x64   :  { %1772 = vmatprep.subr.bf16.mxu1 %v1902_v5  ;;  %v1950_v45 = vld [vmem:[#allocation11 + $0x18] sm:$0xff]   ;;  %v341_v56 = vld [vmem:[%s2533_s5] sm:$0x3] }
  0x65   :  { %v2361_v58 = vrot.slane %v341_v56, %v345_v54  ;;  %v2365_v60 = vrot.slane %v341_v56, %v349_v57  ;;  %v1531_v61 = vld [vmem:[%s2531_s3] ss:$0 sm:$0xff] }
  0x66   :  { %1791 = vmatpush3.bf16.msra.mxu0 %v1939_v34 }
  0x67   :  { %1773 = vmatpush3.bf16.msra.mxu1 %v1902_v5  ;;  %1792 = vmatprep.subr.bf16.mxu0 %v1940_v35 }
  0x68   :  { %1774 = vmatprep.subr.bf16.mxu1 %v1903_v6 }
  0x6a   :  { %1793 = vmatpush3.bf16.msra.mxu0 %v1940_v35 }
  0x6b   :  { %1775 = vmatpush3.bf16.msra.mxu1 %v1903_v6  ;;  %1794 = vmatprep.subr.bf16.mxu0 %v1941_v36 }
  0x6c   :  { %1776 = vmatprep.subr.bf16.mxu1 %v1904_v7 }
  0x6e   :  { %1795 = vmatpush3.bf16.msra.mxu0 %v1941_v36 }
  0x6f   :  { %1777 = vmatpush3.bf16.msra.mxu1 %v1904_v7  ;;  %1796 = vmatprep.subr.bf16.mxu0 %v1942_v37 }
  0x70   :  { %1778 = vmatprep.subr.bf16.mxu1 %v1905_v8 }
  0x72   :  { %1797 = vmatpush3.bf16.msra.mxu0 %v1942_v37 }
  0x73   :  { %1779 = vmatpush3.bf16.msra.mxu1 %v1905_v8  ;;  %1798 = vmatprep.subr.bf16.mxu0 %v1943_v38 }
  0x74   :  { %457 = vmatprep.subr.bf16.mxu1 %v1910_v9 }
  0x76   :  { %1781 = vmatmul.mubr.bf16.vlgmr.msra.gmra.mxu1 %v1907_v10  ;;  %1799 = vmatpush3.bf16.msra.mxu0 %v1943_v38 }
  0x77   :  { %458 = vmatpush1.bf16.msra.mxu1 %v1908_v11  ;;  %1784 = vmatprep.mubr.bf16.mxu1 %v1923_v12 }
  0x78   :  { %459 = vmatprep.subr.bf16.mxu1 %v1913_v13  ;;  %1800 = vmatprep.subr.bf16.mxu0 %v1944_v39 }
  0x7a   :  { %1801 = vmatpush3.bf16.msra.mxu0 %v1944_v39 }
  0x7b   :  { %460 = vmatpush1.bf16.msra.mxu1 %v1911_v14  ;;  %1802 = vmatprep.subr.bf16.mxu0 %v1945_v40 }
  0x7c   :  { %461 = vmatprep.subr.bf16.mxu1 %v1916_v15 }
  0x7e   :  { %1785 = vmatmul.mubr.bf16.gmra.mxu1 %v1924_v16  ;;  %1803 = vmatpush3.bf16.msra.mxu0 %v1945_v40 }
  0x7f   :  { %462 = vmatpush1.bf16.msra.mxu1 %v1914_v17  ;;  %489 = vmatprep.mubr.bf16.mxu1 %v2229_v21 }
  0x80   :  { %463 = vmatprep.subr.bf16.mxu1 %v1919_v18 }
  0x83   :  { %464 = vmatpush1.bf16.msra.mxu1 %v1917_v19 }
  0x84   :  { %465 = vmatprep.subr.bf16.mxu1 %v1922_v20 }
  0x87   :  { %466 = vmatpush1.bf16.msra.mxu1 %v1920_v22 }
  0x88   :  { %467 = vmatprep.subr.bf16.mxu1 %v1927_v23 }
  0x8b   :  { %468 = vmatpush1.bf16.msra.mxu1 %v1925_v24 }
  0x8c   :  { %469 = vmatprep.subr.bf16.mxu1 %v1930_v25 }
  0x8f   :  { %470 = vmatpush1.bf16.msra.mxu1 %v1928_v26 }
  0x90   :  { %471 = vmatprep.subr.bf16.mxu1 %v1933_v27 }
  0x93   :  { %472 = vmatpush1.bf16.msra.mxu1 %v1931_v28 }
  0x94   :  { %1812 = vmatprep.subr.bf16.mxu1 %v1946_v41 }
  0x96   :  { %490 = vmatmul.mubr.bf16.vlgmr.msra.gmra.mxu1 %v1934_v29 }
  0x97   :  { %499 = vmatprep.mubr.bf16.mxu1 %v2229_v21  ;;  %1813 = vmatpush3.bf16.msra.mxu1 %v1946_v41 }
  0x98   :  { %1814 = vmatprep.subr.bf16.mxu1 %v1947_v42 }
  0x9b   :  { %1815 = vmatpush3.bf16.msra.mxu1 %v1947_v42 }
  0x9c   :  { %1816 = vmatprep.subr.bf16.mxu1 %v1948_v43 }
  0x9e   :  { %500 = vmatmul.mubr.bf16.gmra.mxu1 %v1935_v30 }
  0x9f   :  { %509 = vmatprep.mubr.bf16.mxu1 %v2229_v21  ;;  %1817 = vmatpush3.bf16.msra.mxu1 %v1948_v43 }
  0xa0   :  { %1818 = vmatprep.subr.bf16.mxu1 %v1949_v44 }
  0xa3   :  { %1819 = vmatpush3.bf16.msra.mxu1 %v1949_v44 }
  0xa4   :  { %1820 = vmatprep.subr.bf16.mxu1 %v1950_v45 }
  0xa6   :  { %510 = vmatmul.mubr.bf16.gmra.mxu1 %v1936_v31 }
  0xa7   :  { %519 = vmatprep.mubr.bf16.mxu1 %v2229_v21  ;;  %1821 = vmatpush3.bf16.msra.mxu1 %v1950_v45 }
  0xae   :  { %520 = vmatmul.mubr.bf16.gmra.mxu1 %v1937_v32 }
 0x136   :  { %v1782_v46 = vpop.f32.mrf.mxu1 }
 0x137   :  { %v287_v17 = vadd.f32 %v1782_v46, %v1531_v61 }
 0x138   :  { %v278_v47 = vpop.f32.mrf.mxu1 }
 0x139   :  { %v279_v1 = vadd.f32 %v1531_v61, %v278_v47  ;;  %v311_v26 = vmax.f32 %v287_v17, 0.0 }
 0x13a   :  { %v1783_v48 = vpop.f32.mrf.mxu1 }
 0x13b   :  { %v309_v8 = vmax.f32 %v279_v1, 0.0  ;;  %v290_v18 = vadd.f32 %v1783_v48, %v1531_v61 }
 0x13c   :  { %v281_v49 = vpop.f32.mrf.mxu1 }
 0x13d   :  { %v282_v2 = vadd.f32 %v1531_v61, %v281_v49  ;;  %v312_v27 = vmax.f32 %v290_v18, 0.0  ;;  %v1564_v18 = vld [vmem:[%s2535_s7] ss:$0 sm:$0xff] }
 0x13e   :  { %v2348_v51 = vpop.f32.mrf.mxu1 }
 0x13f   :  { %v310_v9 = vmax.f32 %v282_v2, 0.0  ;;  %v303_v56 = vadd.f32 %v2348_v51, %v1531_v61 }
 0x140   :  { %v294_v53 = vpop.f32.mrf.mxu1 }
 0x141   :  { %v295_v35 = vadd.f32 %v1531_v61, %v294_v53 }
 0x142   :  { %v2353_v55 = vpop.f32.mrf.mxu1 }
 0x143   :  { %v313_v43 = vmax.f32 %v295_v35, 0.0 }
 0x144   :  { %v297_v59 = vpop.f32.mrf.mxu1 }
 0x145   :  { %v298_v36 = vadd.f32 %v1531_v61, %v297_v59  ;;  %v306_v59 = vadd.f32 %v2353_v55, %v1531_v61  ;;  %v1951_v55 = vld [vmem:[#allocation11 + $0x10] sm:$0xff]   ;;  %v1952_v61 = vld [vmem:[#allocation11 + $0x8] sm:$0xff]  }
 0x146   :  { %1822 = vmatprep.subr.bf16.mxu1 %v1951_v55 }
 0x147   :  { %v314_v44 = vmax.f32 %v298_v36, 0.0  ;;  %1823 = vmatpush3.bf16.msra.mxu1 %v1951_v55  ;;  %v1966_v55 = vld [vmem:[#allocation11 + $0x58] sm:$0xff]  }
 0x148   :  { %1824 = vmatprep.subr.bf16.mxu1 %v1952_v61 }
 0x14b   :  { %1825 = vmatpush3.bf16.msra.mxu1 %v1952_v61 }
 0x156   :  { %v491_v62 = vpop.f32.mrf.mxu1 }
 0x157   :  { %v492_v63 = vadd.f32 %v491_v62, %v2361_v58 }
 0x158   :  { %v493_v0 = vpop.f32.mrf.mxu1 }
 0x159   :  { %v2372_v3 = vadd.f32 %v493_v0, %v2365_v60  ;;  %v530_v5 = vmax.f32 %v492_v63, 0.0 }
 0x15a   :  { %v495_v4 = vpop.f32.mrf.mxu1 }
 0x15b   :  { %v496_v6 = vadd.f32 %v495_v4, %v2361_v58  ;;  %v2379_v14 = vadd.f32 %v530_v5, %v309_v8  ;;  %v315_v4 = vmax.f32 %v303_v56, 0.0  ;;  %v316_v5 = vmax.f32 %v306_v59, 0.0 }
 0x15c   :  { %v497_v7 = vpop.f32.mrf.mxu1 }
 0x15d   :  { %v532_v10 = vmax.f32 %v496_v6, 0.0  ;;  %v2376_v11 = vadd.f32 %v497_v7, %v2365_v60 }
 0x15e   :  { %v501_v12 = vpop.f32.mrf.mxu1 }
 0x15f   :  { %v502_v13 = vadd.f32 %v501_v12, %v2361_v58  ;;  %v2381_v15 = vadd.f32 %v532_v10, %v310_v9  ;;  %v1953_v9 = vld [vmem:[#allocation11] sm:$0xff]   ;;  %v1955_v10 = vld [vmem:[#allocation10 + $0x70] sm:$0xff]   ;;  %v1956_v12 = vld [vmem:[#allocation10 + $0x68] sm:$0xff]  }
 0x160   :  { %v503_v16 = vpop.f32.mrf.mxu1  ;;  %1826 = vmatprep.subr.bf16.mxu1 %v1953_v9 }
 0x161   :  { %v2384_v19 = vadd.f32 %v503_v16, %v2365_v60  ;;  %v554_v20 = vpack.c.bf16 %v2381_v15, %v2379_v14  ;;  %v534_v23 = vmax.f32 %v502_v13, 0.0  ;;  %1827 = vmatpush3.bf16.msra.mxu1 %v1953_v9  ;;  %v1957_v13 = vld [vmem:[#allocation10 + $0x60] sm:$0xff]  }
 0x162   :  { %v505_v22 = vpop.f32.mrf.mxu1  ;;  %v1573_v9 = vld [vmem:[%s2537_s9] ss:$0 sm:$0xff] }
 0x163   :  { %v506_v24 = vadd.f32 %v505_v22, %v2361_v58  ;;  %1804 = vmatprep.mubr.bf16.mxu0 %v554_v20  ;;  %v2392_v31 = vadd.f32 %v534_v23, %v311_v26 }
 0x164   :  { %v507_v25 = vpop.f32.mrf.mxu1 }
 0x165   :  { %v536_v28 = vmax.f32 %v506_v24, 0.0  ;;  %v2390_v29 = vadd.f32 %v507_v25, %v2365_v60 }
 0x166   :  { %v511_v30 = vpop.f32.mrf.mxu1 }
 0x167   :  { %v2394_v32 = vadd.f32 %v536_v28, %v312_v27  ;;  %v512_v33 = vadd.f32 %v511_v30, %v2361_v58 }
 0x168   :  { %v513_v34 = vpop.f32.mrf.mxu1 }
 0x169   :  { %v2398_v37 = vadd.f32 %v513_v34, %v2365_v60  ;;  %v555_v38 = vpack.c.bf16 %v2394_v32, %v2392_v31  ;;  %v538_v40 = vmax.f32 %v512_v33, 0.0 }
 0x16a   :  { %v515_v39 = vpop.f32.mrf.mxu1 }
 0x16b   :  { %v516_v41 = vadd.f32 %v515_v39, %v2361_v58  ;;  %1805 = vmatmul.mubr.bf16.vlgmr.msra.gmra.mxu0 %v555_v38  ;;  %v2406_v48 = vadd.f32 %v538_v40, %v313_v43 }
 0x16c   :  { %v517_v42 = vpop.f32.mrf.mxu1 }
 0x16d   :  { %v540_v45 = vmax.f32 %v516_v41, 0.0  ;;  %v2404_v46 = vadd.f32 %v517_v42, %v2365_v60 }
 0x16e   :  { %v521_v47 = vpop.f32.mrf.mxu1 }
 0x16f   :  { %v2408_v49 = vadd.f32 %v540_v45, %v314_v44  ;;  %v522_v50 = vadd.f32 %v521_v47, %v2361_v58 }
 0x170   :  { %v523_v53 = vpop.f32.mrf.mxu1 }
 0x171   :  { %v2414_v62 = vadd.f32 %v523_v53, %v2365_v60  ;;  %v556_v63 = vpack.c.bf16 %v2408_v49, %v2406_v48  ;;  %v542_v1 = vmax.f32 %v522_v50, 0.0 }
 0x172   :  { %v525_v0 = vpop.f32.mrf.mxu1 }
 0x173   :  { %v526_v2 = vadd.f32 %v525_v0, %v2361_v58  ;;  %1808 = vmatprep.mubr.bf16.mxu0 %v556_v63  ;;  %v2419_v7 = vadd.f32 %v542_v1, %v315_v4  ;;  %v1954_v58 = vld [vmem:[#allocation10 + $0x78] sm:$0xff]   ;;  %v1959_v0 = vld [vmem:[#allocation10 + $0x50] sm:$0xff]   ;;  %v1960_v1 = vld [vmem:[#allocation10 + $0x48] sm:$0xff]  }
 0x174   :  { %1836 = vmatprep.subr.bf16.mxu0 %v1954_v58  ;;  %v1958_v63 = vld [vmem:[#allocation10 + $0x58] sm:$0xff]   ;;  %v527_v61 = vpop.f32.mrf.mxu1 }
 0x175   :  { %v544_v6 = vmax.f32 %v526_v2, 0.0  ;;  %1837 = vmatpush3.bf16.msra.mxu0 %v1954_v58  ;;  %v1961_v2 = vld [vmem:[#allocation10 + $0x40] sm:$0xff]   ;;  %v1962_v4 = vld [vmem:[#allocation11 + $0x78] sm:$0xff]  }
 0x176   :  { %1838 = vmatprep.subr.bf16.mxu0 %v1955_v10  ;;  %1860 = vmatprep.subr.bf16.mxu1 %v1962_v4 }
 0x177   :  { %v2421_v8 = vadd.f32 %v544_v6, %v316_v5  ;;  %v1963_v5 = vld [vmem:[#allocation11 + $0x70] sm:$0xff]   ;;  %v1964_v6 = vld [vmem:[#allocation11 + $0x68] sm:$0xff]  }
 0x179   :  { %v557_v51 = vpack.c.bf16 %v2421_v8, %v2419_v7  ;;  %1839 = vmatpush3.bf16.msra.mxu0 %v1955_v10 }
 0x17a   :  { %1840 = vmatprep.subr.bf16.mxu0 %v1956_v12 }
 0x17b   :  { %1809 = vmatmul.mubr.bf16.gmra.mxu0 %v557_v51  ;;  %v1965_v51 = vld [vmem:[#allocation11 + $0x60] sm:$0xff]  }
 0x17d   :  { %1841 = vmatpush3.bf16.msra.mxu0 %v1956_v12 }
 0x17e   :  { %1842 = vmatprep.subr.bf16.mxu0 %v1957_v13 }
 0x181   :  { %1843 = vmatpush3.bf16.msra.mxu0 %v1957_v13 }
 0x182   :  { %1844 = vmatprep.subr.bf16.mxu0 %v1958_v63 }
 0x185   :  { %1845 = vmatpush3.bf16.msra.mxu0 %v1958_v63 }
 0x186   :  { %1846 = vmatprep.subr.bf16.mxu0 %v1959_v0 }
 0x189   :  { %1847 = vmatpush3.bf16.msra.mxu0 %v1959_v0 }
 0x18a   :  { %1848 = vmatprep.subr.bf16.mxu0 %v1960_v1 }
 0x18d   :  { %1849 = vmatpush3.bf16.msra.mxu0 %v1960_v1  ;;  %v539_v1 = vmax.f32 %v2398_v37, 0.0  ;;  %v1967_v37 = vld [vmem:[#allocation11 + $0x50] sm:$0xff]  }
 0x18e   :  { %1850 = vmatprep.subr.bf16.mxu0 %v1961_v2 }
 0x191   :  { %1851 = vmatpush3.bf16.msra.mxu0 %v1961_v2  ;;  %v541_v2 = vmax.f32 %v2404_v46, 0.0  ;;  %v1968_v46 = vld [vmem:[#allocation11 + $0x48] sm:$0xff]  }
 0x22b   :  { %v1806_v16 = vpop.f32.mrf.mxu0 }
 0x22c   :  { %v672_v24 = vadd.f32 %v1806_v16, %v1564_v18 }
 0x22d   :  { %v663_v17 = vpop.f32.mrf.mxu0 }
 0x22e   :  { %v664_v22 = vadd.f32 %v1564_v18, %v663_v17  ;;  %v696_v33 = vmax.f32 %v672_v24, 0.0 }
 0x22f   :  { %v1807_v20 = vpop.f32.mrf.mxu0 }
 0x230   :  { %v675_v23 = vadd.f32 %v1807_v20, %v1564_v18  ;;  %v694_v28 = vmax.f32 %v664_v22, 0.0 }
 0x231   :  { %v666_v25 = vpop.f32.mrf.mxu0 }
 0x232   :  { %v667_v26 = vadd.f32 %v1564_v18, %v666_v25  ;;  %v697_v27 = vmax.f32 %v675_v23, 0.0 }
 0x234   :  { %v695_v30 = vmax.f32 %v667_v26, 0.0  ;;  %v703_v35 = vpack.c.bf16 %v697_v27, %v696_v33  ;;  %v531_v33 = vmax.f32 %v2372_v3, 0.0 }
 0x236   :  { %v702_v34 = vpack.c.bf16 %v695_v30, %v694_v28  ;;  %v537_v28 = vmax.f32 %v2390_v29, 0.0 }
 0x238   :  { %1828 = vmatprep.mubr.bf16.mxu1 %v702_v34  ;;  %v533_v34 = vmax.f32 %v2376_v11, 0.0 }
 0x239   :  { %1829 = vmatmul.mubr.bf16.vlgmr.msra.gmra.mxu1 %v703_v35 }
 0x23a   :  { %1861 = vmatpush3.bf16.msra.mxu1 %v1962_v4  ;;  %v543_v4 = vmax.f32 %v2414_v62, 0.0  ;;  %v1969_v62 = vld [vmem:[#allocation11 + $0x40] sm:$0xff]  }
 0x23b   :  { %v1810_v36 = vpop.f32.mrf.mxu0  ;;  %1862 = vmatprep.subr.bf16.mxu1 %v1963_v5 }
 0x23c   :  { %v688_v42 = vadd.f32 %v1810_v36, %v1564_v18 }
 0x23d   :  { %v679_v38 = vpop.f32.mrf.mxu0 }
 0x23e   :  { %v680_v40 = vadd.f32 %v1564_v18, %v679_v38  ;;  %v700_v53 = vmax.f32 %v688_v42, 0.0  ;;  %1863 = vmatpush3.bf16.msra.mxu1 %v1963_v5 }
 0x23f   :  { %v1811_v39 = vpop.f32.mrf.mxu0  ;;  %1864 = vmatprep.subr.bf16.mxu1 %v1964_v6 }
 0x240   :  { %v691_v41 = vadd.f32 %v1811_v39, %v1564_v18  ;;  %v698_v47 = vmax.f32 %v680_v40, 0.0 }
 0x241   :  { %v682_v43 = vpop.f32.mrf.mxu0 }
 0x242   :  { %v683_v44 = vadd.f32 %v1564_v18, %v682_v43  ;;  %v701_v45 = vmax.f32 %v691_v41, 0.0  ;;  %1865 = vmatpush3.bf16.msra.mxu1 %v1964_v6  ;;  %v528_v43 = vadd.f32 %v527_v61, %v2365_v60  ;;  %v1975_v61 = vld [vmem:[#allocation13 + $0x64] ss:$8 sps:$4 sm:$0xff]  }
 0x243   :  { %1866 = vmatprep.subr.bf16.mxu1 %v1965_v51 }
 0x244   :  { %v699_v50 = vmax.f32 %v683_v44, 0.0  ;;  %v705_v59 = vpack.c.bf16 %v701_v45, %v700_v53  ;;  %v545_v63 = vmax.f32 %v528_v43, 0.0 }
 0x246   :  { %v704_v56 = vpack.c.bf16 %v699_v50, %v698_v47  ;;  %1867 = vmatpush3.bf16.msra.mxu1 %v1965_v51  ;;  %v1970_v51 = vld [vmem:[#allocation13 + $0x70] ss:$8 sps:$4 sm:$0xff]  }
 0x247   :  { %1868 = vmatprep.subr.bf16.mxu1 %v1966_v55 }
 0x248   :  { %1832 = vmatprep.mubr.bf16.mxu1 %v704_v56 }
 0x249   :  { %1833 = vmatmul.mubr.bf16.gmra.mxu1 %v705_v59 }
 0x24a   :  { %1869 = vmatpush3.bf16.msra.mxu1 %v1966_v55  ;;  %v1972_v55 = vld [vmem:[#allocation13 + $0x74] ss:$8 sps:$4 sm:$0xff]  }
 0x24b   :  { %1870 = vmatprep.subr.bf16.mxu1 %v1967_v37  ;;  %1286 = vmatprep.subr.bf16.mxu0 %v1972_v55 }
 0x24e   :  { %1871 = vmatpush3.bf16.msra.mxu1 %v1967_v37 }
 0x24f   :  { %1872 = vmatprep.subr.bf16.mxu1 %v1968_v46 }
 0x252   :  { %1873 = vmatpush3.bf16.msra.mxu1 %v1968_v46 }
 0x253   :  { %1874 = vmatprep.subr.bf16.mxu1 %v1969_v62 }
 0x256   :  { %1875 = vmatpush3.bf16.msra.mxu1 %v1969_v62 }
 0x2f9   :  { %v1830_v58 = vpop.f32.mrf.mxu1 }
 0x2fa   :  { %v820_v10 = vadd.f32 %v1830_v58, %v1573_v9  ;;  %v1978_v58 = vld [vmem:[#allocation13 + $0x54] ss:$8 sps:$4 sm:$0xff]  }
 0x2fb   :  { %v811_v12 = vpop.f32.mrf.mxu1 }
 0x2fc   :  { %v812_v13 = vadd.f32 %v1573_v9, %v811_v12  ;;  %v844_v20 = vadd.f32 %v820_v10, %v2392_v31  ;;  %v1976_v10 = vld [vmem:[#allocation13 + $0x50] ss:$8 sps:$4 sm:$0xff]   ;;  %v1981_v12 = vld [vmem:[#allocation13 + $0x44] ss:$8 sps:$4 sm:$0xff]  }
 0x2fd   :  { %v1831_v16 = vpop.f32.mrf.mxu1 }
 0x2fe   :  { %v842_v17 = vadd.f32 %v812_v13, %v2379_v14  ;;  %v823_v18 = vadd.f32 %v1831_v16, %v1573_v9  ;;  %v852_v30 = vmax.f32 %v844_v20, 0.0  ;;  %v535_v14 = vmax.f32 %v2384_v19, 0.0  ;;  %v1979_v13 = vld [vmem:[#allocation13 + $0x40] ss:$8 sps:$4 sm:$0xff]   ;;  %v1984_v16 = vld [vmem:[#allocation13 + $0x34] ss:$8 sps:$4 sm:$0xff]  }
 0x2ff   :  { %v814_v22 = vpop.f32.mrf.mxu1 }
 0x300   :  { %v845_v23 = vadd.f32 %v823_v18, %v2394_v32  ;;  %v815_v24 = vadd.f32 %v1573_v9, %v814_v22  ;;  %v850_v25 = vmax.f32 %v842_v17, 0.0  ;;  %v2445_v38 = vadd.f32 %v852_v30, %v535_v14  ;;  %v1982_v17 = vld [vmem:[#allocation13 + $0x30] ss:$8 sps:$4 sm:$0xff]   ;;  %v1583_v22 = vld [vmem:[%s2535_s7 + $0x1] ss:$0 sm:$0xff] }
 0x302   :  { %v853_v26 = vmax.f32 %v845_v23, 0.0  ;;  %v843_v27 = vadd.f32 %v815_v24, %v2381_v15  ;;  %v2441_v31 = vadd.f32 %v850_v25, %v531_v33 }
 0x304   :  { %v851_v35 = vmax.f32 %v843_v27, 0.0  ;;  %v2439_v36 = vadd.f32 %v853_v26, %v537_v28 }
 0x306   :  { %v2443_v32 = vadd.f32 %v851_v35, %v533_v34  ;;  %v867_v29 = vpack.c.bf16 %v2439_v36, %v2445_v38 }
 0x308   :  { %v866_v15 = vpack.c.bf16 %v2443_v32, %v2441_v31 }
 0x309   :  { %v1834_v3 = vpop.f32.mrf.mxu1 }
 0x30a   :  { %1852 = vmatprep.mubr.bf16.mxu0 %v866_v15  ;;  %v836_v11 = vadd.f32 %v1834_v3, %v1573_v9 }
 0x30b   :  { %v827_v39 = vpop.f32.mrf.mxu1  ;;  %1853 = vmatmul.mubr.bf16.vlgmr.msra.gmra.mxu0 %v867_v29 }
 0x30c   :  { %v828_v19 = vadd.f32 %v1573_v9, %v827_v39  ;;  %v848_v44 = vadd.f32 %v836_v11, %v2419_v7  ;;  %1287 = vmatpush1.bf16.msra.mxu0 %v1970_v51 }
 0x30d   :  { %v1835_v40 = vpop.f32.mrf.mxu1  ;;  %1288 = vmatprep.subr.bf16.mxu0 %v1975_v61 }
 0x30e   :  { %v846_v41 = vadd.f32 %v828_v19, %v2406_v48  ;;  %v839_v42 = vadd.f32 %v1835_v40, %v1573_v9  ;;  %v856_v0 = vmax.f32 %v848_v44, 0.0 }
 0x30f   :  { %v830_v45 = vpop.f32.mrf.mxu1 }
 0x310   :  { %v849_v47 = vadd.f32 %v839_v42, %v2421_v8  ;;  %v831_v50 = vadd.f32 %v1573_v9, %v830_v45  ;;  %v854_v53 = vmax.f32 %v846_v41, 0.0  ;;  %v2465_v8 = vadd.f32 %v856_v0, %v543_v4  ;;  %v1973_v9 = vld [vmem:[#allocation13 + $0x60] ss:$8 sps:$4 sm:$0xff]   ;;  %v1988_v0 = vld [vmem:[#allocation13 + $0x10] ss:$8 sps:$4 sm:$0xff]  }
 0x311   :  { %1289 = vmatpush1.bf16.msra.mxu0 %v1973_v9  ;;  %v1593_v4 = vld [vmem:[%s2537_s9 + $0x1] ss:$0 sm:$0xff] }
 0x312   :  { %v857_v56 = vmax.f32 %v849_v47, 0.0  ;;  %v847_v59 = vadd.f32 %v831_v50, %v2408_v49  ;;  %v2461_v7 = vadd.f32 %v854_v53, %v539_v1  ;;  %1290 = vmatprep.subr.bf16.mxu0 %v1978_v58  ;;  %v1993_v1 = vld [vmem:[#allocation13 + $0x4] ss:$8 sps:$4 sm:$0xff]  }
 0x314   :  { %v855_v48 = vmax.f32 %v847_v59, 0.0  ;;  %v2459_v60 = vadd.f32 %v857_v56, %v545_v63  ;;  %v1987_v56 = vld [vmem:[#allocation13 + $0x24] ss:$8 sps:$4 sm:$0xff]   ;;  %v1985_v59 = vld [vmem:[#allocation13 + $0x20] ss:$8 sps:$4 sm:$0xff]  }
 0x315   :  { %1291 = vmatpush1.bf16.msra.mxu0 %v1976_v10  ;;  %v1990_v63 = vld [vmem:[#allocation13 + $0x14] ss:$8 sps:$4 sm:$0xff]  }
 0x316   :  { %v2463_v5 = vadd.f32 %v855_v48, %v541_v2  ;;  %v869_v6 = vpack.c.bf16 %v2459_v60, %v2465_v8  ;;  %1292 = vmatprep.subr.bf16.mxu0 %v1981_v12  ;;  %v1991_v2 = vld [vmem:[#allocation13] ss:$8 sps:$4 sm:$0xff]  }
 0x318   :  { %v868_v49 = vpack.c.bf16 %v2463_v5, %v2461_v7 }
 0x319   :  { %1293 = vmatpush1.bf16.msra.mxu0 %v1979_v13 }
 0x31a   :  { %1856 = vmatprep.mubr.bf16.mxu0 %v868_v49  ;;  %1294 = vmatprep.subr.bf16.mxu0 %v1984_v16 }
 0x31b   :  { %1857 = vmatmul.mubr.bf16.gmra.mxu0 %v869_v6 }
 0x31c   :  { %1318 = vmatprep.mubr.bf16.mxu0 %v2229_v21 }
 0x31d   :  { %1295 = vmatpush1.bf16.msra.mxu0 %v1982_v17 }
 0x31e   :  { %1296 = vmatprep.subr.bf16.mxu0 %v1987_v56 }
 0x321   :  { %1297 = vmatpush1.bf16.msra.mxu0 %v1985_v59 }
 0x322   :  { %1298 = vmatprep.subr.bf16.mxu0 %v1990_v63 }
 0x325   :  { %1299 = vmatpush1.bf16.msra.mxu0 %v1988_v0 }
 0x326   :  { %1300 = vmatprep.subr.bf16.mxu0 %v1993_v1 }
 0x329   :  { %1301 = vmatpush1.bf16.msra.mxu0 %v1991_v2 }
 0x3cb   :  { %v1854_v18 = vpop.f32.mrf.mxu0 }
 0x3cc   :  { %v986_v26 = vadd.f32 %v1854_v18, %v1583_v22 }
 0x3cd   :  { %v977_v20 = vpop.f32.mrf.mxu0 }
 0x3ce   :  { %v978_v24 = vadd.f32 %v1583_v22, %v977_v20  ;;  %v1010_v35 = vmax.f32 %v986_v26, 0.0 }
 0x3cf   :  { %v1855_v23 = vpop.f32.mrf.mxu0 }
 0x3d0   :  { %v989_v25 = vadd.f32 %v1855_v23, %v1583_v22  ;;  %v1008_v33 = vmax.f32 %v978_v24, 0.0 }
 0x3d1   :  { %v980_v27 = vpop.f32.mrf.mxu0 }
 0x3d2   :  { %v981_v28 = vadd.f32 %v1583_v22, %v980_v27  ;;  %v1011_v30 = vmax.f32 %v989_v25, 0.0 }
 0x3d4   :  { %v1009_v34 = vmax.f32 %v981_v28, 0.0  ;;  %v1017_v15 = vpack.c.bf16 %v1011_v30, %v1010_v35 }
 0x3d6   :  { %v1016_v14 = vpack.c.bf16 %v1009_v34, %v1008_v33 }
 0x3d8   :  { %1876 = vmatprep.mubr.bf16.mxu1 %v1016_v14 }
 0x3d9   :  { %1877 = vmatmul.mubr.bf16.vlgmr.msra.gmra.mxu1 %v1017_v15 }
 0x3db   :  { %v1858_v29 = vpop.f32.mrf.mxu0 }
 0x3dc   :  { %v1002_v40 = vadd.f32 %v1858_v29, %v1583_v22  ;;  %v1194_v29 = vld [vmem:[%s2539_s11] sm:$0x3]  ;;  %s2230_s11 = smov [#allocation14]  }
 0x3dd   :  { %v993_v3 = vpop.f32.mrf.mxu0  ;;  %s1500_s20 = sshll.u32 %s2230_s11, 4  ;;  %s1501_s20 = int_to_ptr.vmem [resolvable:$true] %s1500_s20 }
 0x3de   :  { %v994_v39 = vadd.f32 %v1583_v22, %v993_v3  ;;  %v1014_v47 = vmax.f32 %v1002_v40, 0.0  ;;  %s2166_s8 = scalar_lea.vmem %s1501_s20, 512  ;;  %p2171_p8 = scmp.lt.s32.totalorder %s1501_s20, %s1501_s20 }
 0x3df   :  { %v1859_v11 = vpop.f32.mrf.mxu0  ;;  %p2167_p7 = scmp.ne.s32.totalorder %s1501_s20, %s2166_s8  ;;  %p2172_p9 = scmp.lt.s32.totalorder %s2166_s8, %s2166_s8 }
 0x3e0   :  { %v1005_v19 = vadd.f32 %v1859_v11, %v1583_v22  ;;  %v1012_v44 = vmax.f32 %v994_v39, 0.0 }
 0x3e1   :  { %v996_v41 = vpop.f32.mrf.mxu0  ;;  %p2173_p10 = por %p2172_p9, %p2171_p8 }
 0x3e2   :  { %v997_v42 = vadd.f32 %v1583_v22, %v996_v41  ;;  %v1015_v43 = vmax.f32 %v1005_v19, 0.0 }
 0x3e3   :  { %p2174_p11 = pnand %p2173_p10, %p2167_p7 }
 0x3e4   :  { %v1013_v45 = vmax.f32 %v997_v42, 0.0  ;;  %v1019_v53 = vpack.c.bf16 %v1015_v43, %v1014_v47 }
 0x3e6   :  { %v1018_v50 = vpack.c.bf16 %v1013_v45, %v1012_v44 }
 0x3e8   :  { %1880 = vmatprep.mubr.bf16.mxu1 %v1018_v50 }
 0x3e9   :  { %1881 = vmatmul.mubr.bf16.gmra.mxu1 %v1019_v53 }
 0x499   :  { %v1878_v48 = vpop.f32.mrf.mxu1 }
 0x49a   :  { %v1136_v9 = vadd.f32 %v1878_v48, %v1593_v4 }
 0x49b   :  { %v1127_v49 = vpop.f32.mrf.mxu1 }
 0x49c   :  { %v1128_v6 = vadd.f32 %v1593_v4, %v1127_v49  ;;  %v1160_v16 = vadd.f32 %v1136_v9, %v2445_v38 }
 0x49d   :  { %v1879_v37 = vpop.f32.mrf.mxu1 }
 0x49e   :  { %v1158_v62 = vadd.f32 %v1128_v6, %v2441_v31  ;;  %v1139_v55 = vadd.f32 %v1879_v37, %v1593_v4  ;;  %v1168_v22 = vmax.f32 %v1160_v16, 0.0 }
 0x49f   :  { %v1130_v46 = vpop.f32.mrf.mxu1 }
 0x4a0   :  { %v1131_v51 = vadd.f32 %v1593_v4, %v1130_v46  ;;  %v1166_v58 = vmax.f32 %v1158_v62, 0.0  ;;  %v1161_v12 = vadd.f32 %v1139_v55, %v2439_v36 }
 0x4a2   :  { %v1159_v61 = vadd.f32 %v1131_v51, %v2443_v32  ;;  %v1169_v18 = vmax.f32 %v1161_v12, 0.0 }
 0x4a4   :  { %v1167_v10 = vmax.f32 %v1159_v61, 0.0  ;;  %v1175_v24 = vpack.c.bf16 %v1169_v18, %v1168_v22 }
 0x4a6   :  { %v1174_v13 = vpack.c.bf16 %v1167_v10, %v1166_v58 }
 0x4a8   :  { %1319 = vmatmul.mubr.bf16.vlgmr.msra.gmra.mxu0 %v1174_v13 }
 0x4a9   :  { %v1882_v17 = vpop.f32.mrf.mxu1  ;;  %1328 = vmatprep.mubr.bf16.mxu0 %v2229_v21 }
 0x4aa   :  { %v1152_v27 = vadd.f32 %v1882_v17, %v1593_v4 }
 0x4ab   :  { %v1143_v20 = vpop.f32.mrf.mxu1 }
 0x4ac   :  { %v1144_v31 = vadd.f32 %v1593_v4, %v1143_v20  ;;  %v1164_v35 = vadd.f32 %v1152_v27, %v2465_v8 }
 0x4ad   :  { %v1883_v23 = vpop.f32.mrf.mxu1 }
 0x4ae   :  { %v1162_v32 = vadd.f32 %v1144_v31, %v2461_v7  ;;  %v1155_v36 = vadd.f32 %v1883_v23, %v1593_v4  ;;  %v1172_v7 = vmax.f32 %v1164_v35, 0.0 }
 0x4af   :  { %v1146_v25 = vpop.f32.mrf.mxu1 }
 0x4b0   :  { %v1147_v26 = vadd.f32 %v1593_v4, %v1146_v25  ;;  %1329 = vmatmul.mubr.bf16.gmra.mxu0 %v1175_v24  ;;  %v1170_v28 = vmax.f32 %v1162_v32, 0.0  ;;  %v1165_v33 = vadd.f32 %v1155_v36, %v2459_v60  ;;  %v2498_v60 = vrot.slane %v1194_v29, %v349_v57 }
 0x4b1   :  { %1338 = vmatprep.mubr.bf16.mxu0 %v2229_v21 }
 0x4b2   :  { %v1163_v38 = vadd.f32 %v1147_v26, %v2463_v5  ;;  %v1173_v14 = vmax.f32 %v1165_v33, 0.0  ;;  %v2494_v5 = vrot.slane %v1194_v29, %v345_v54 }
 0x4b4   :  { %v1171_v30 = vmax.f32 %v1163_v38, 0.0  ;;  %v1177_v15 = vpack.c.bf16 %v1173_v14, %v1172_v7 }
 0x4b6   :  { %v1176_v34 = vpack.c.bf16 %v1171_v30, %v1170_v28 }
 0x4b8   :  { %1339 = vmatmul.mubr.bf16.gmra.mxu0 %v1176_v34 }
 0x4b9   :  { %1348 = vmatprep.mubr.bf16.mxu0 %v2229_v21 }
 0x4c0   :  { %1349 = vmatmul.mubr.bf16.gmra.mxu0 %v1177_v15 }
 0x568   :  { %v1320_v8 = vpop.f32.mrf.mxu0 }
 0x569   :  { %v1321_v21 = vadd.f32 %v1320_v8, %v2494_v5 }
 0x56a   :  { %v1322_v3 = vpop.f32.mrf.mxu0 }
 0x56b   :  { %v1323_v11 = vadd.f32 %v1322_v3, %v2498_v60  ;;  %v1359_v42 = vmax.f32 %v1321_v21, 0.0 }
 0x56c   :  { %v1324_v39 = vpop.f32.mrf.mxu0 }
 0x56d   :  { %v1626_v19 = vmul.f32 -1.442695, %v1323_v11  ;;  %v1325_v40 = vadd.f32 %v1324_v39, %v2494_v5 }
 0x56e   :  { %v1326_v41 = vpop.f32.mrf.mxu0 }
 0x56f   :  { %1994 = vpow2.f32 %v1626_v19  ;;  %v1360_v43 = vmax.f32 %v1325_v40, 0.0  ;;  %v1327_v54 = vadd.f32 %v1326_v41, %v2498_v60 }
 0x570   :  { %v1330_v44 = vpop.f32.mrf.mxu0 }
 0x571   :  { %v1661_v52 = vpack.c.bf16 %v1360_v43, %v1359_v42  ;;  %v1627_v57 = vmul.f32 -1.442695, %v1327_v54  ;;  %v1331_v47 = vadd.f32 %v1330_v44, %v2494_v5 }
 0x572   :  { %v1332_v45 = vpop.f32.mrf.mxu0 }
 0x573   :  { %1662 = vst [vmem:[#allocation14] sm:$0xff] %v1661_v52   ;;  %1996 = vpow2.f32 %v1627_v57  ;;  %v1333_v50 = vadd.f32 %v1332_v45, %v2498_v60  ;;  %v1361_v0 = vmax.f32 %v1331_v47, 0.0 }
 0x574   :  { %v1334_v53 = vpop.f32.mrf.mxu0 }
 0x575   :  { %v1628_v56 = vmul.f32 -1.442695, %v1333_v50  ;;  %v1335_v59 = vadd.f32 %v1334_v53, %v2494_v5 }
 0x576   :  { %v1336_v63 = vpop.f32.mrf.mxu0 }
 0x577   :  { %1998 = vpow2.f32 %v1628_v56  ;;  %v1362_v1 = vmax.f32 %v1335_v59, 0.0  ;;  %v1337_v2 = vadd.f32 %v1336_v63, %v2498_v60 }
 0x578   :  { %v1340_v48 = vpop.f32.mrf.mxu0 }
 0x579   :  { %v1666_v4 = vpack.c.bf16 %v1362_v1, %v1361_v0  ;;  %v1629_v49 = vmul.f32 -1.442695, %v1337_v2  ;;  %v1341_v37 = vadd.f32 %v1340_v48, %v2494_v5 }
 0x57a   :  { %v1342_v6 = vpop.f32.mrf.mxu0 }
 0x57b   :  { %1698 = vst [vmem:[#allocation14 + $0x8] sm:$0xff] %v1666_v4   ;;  %2000 = vpow2.f32 %v1629_v49  ;;  %v1343_v46 = vadd.f32 %v1342_v6, %v2498_v60  ;;  %v1363_v10 = vmax.f32 %v1341_v37, 0.0 }
 0x57c   :  { %v1995_v62 = vpop.eup %1994  ;;  %v1344_v51 = vpop.f32.mrf.mxu0 }
 0x57d   :  { %v1630_v55 = vmul.f32 -1.442695, %v1343_v46  ;;  %v1345_v61 = vadd.f32 %v1344_v51, %v2494_v5  ;;  %v1431_v9 = vadd.f32 1.0, %v1995_v62 }
 0x57e   :  { %v1346_v58 = vpop.f32.mrf.mxu0 }
 0x57f   :  { %v1364_v12 = vmax.f32 %v1345_v61, 0.0  ;;  %v1347_v13 = vadd.f32 %v1346_v58, %v2498_v60  ;;  %2002 = vpow2.f32 %v1630_v55 }
 0x580   :  { %v1997_v16 = vpop.eup %1996  ;;  %v1350_v17 = vpop.f32.mrf.mxu0  ;;  %2004 = vrcp.f32 %v1431_v9 }
 0x581   :  { %v1432_v18 = vadd.f32 1.0, %v1997_v16  ;;  %v1671_v20 = vpack.c.bf16 %v1364_v12, %v1363_v10  ;;  %v1631_v22 = vmul.f32 -1.442695, %v1347_v13  ;;  %v1351_v23 = vadd.f32 %v1350_v17, %v2494_v5 }
 0x582   :  { %v1352_v31 = vpop.f32.mrf.mxu0 }
 0x583   :  { %2006 = vrcp.f32 %v1432_v18  ;;  %1699 = vst [vmem:[#allocation14 + $0x10] sm:$0xff] %v1671_v20   ;;  %v1353_v24 = vadd.f32 %v1352_v31, %v2498_v60  ;;  %v1365_v28 = vmax.f32 %v1351_v23, 0.0 }
 0x584   :  { %v1999_v25 = vpop.eup %1998  ;;  %2008 = vpow2.f32 %v1631_v22  ;;  %v1354_v32 = vpop.f32.mrf.mxu0 }
 0x585   :  { %v1632_v26 = vmul.f32 -1.442695, %v1353_v24  ;;  %v1355_v36 = vadd.f32 %v1354_v32, %v2494_v5  ;;  %v1433_v38 = vadd.f32 1.0, %v1999_v25 }
 0x586   :  { %v1356_v27 = vpop.f32.mrf.mxu0 }
 0x587   :  { %v1366_v30 = vmax.f32 %v1355_v36, 0.0  ;;  %v1357_v33 = vadd.f32 %v1356_v27, %v2498_v60  ;;  %2010 = vpow2.f32 %v1632_v26 }
 0x588   :  { %v2001_v34 = vpop.eup %2000  ;;  %2012 = vrcp.f32 %v1433_v38 }
 0x589   :  { %v1434_v35 = vadd.f32 1.0, %v2001_v34  ;;  %v1676_v14 = vpack.c.bf16 %v1366_v30, %v1365_v28  ;;  %v1633_v7 = vmul.f32 -1.442695, %v1357_v33 }
 0x58b   :  { %2014 = vrcp.f32 %v1434_v35  ;;  %1700 = vst [vmem:[#allocation14 + $0x18] sm:$0xff] %v1676_v14  }
 0x58c   :  { %2016 = vpow2.f32 %v1633_v7 }
 0x58d   :  { %2177 = shalt.err (!%p2174_p11)
}
 0x58e   :  { %1506 = dma.vmem_to_hbm [thread:$0]  %s1501_s20, 512, %s2540_s12, [#allocation4], %s2220_s30, %s2220_s30, %s2221_s14   ;;  %v2003_v15 = vpop.eup %2002 }
 0x58f   :  { %v2005_v29 = vpop.eup %2004  ;;  %v1435_v5 = vadd.f32 1.0, %v2003_v15  ;;  %s2231_s12 = smov [#allocation15]  }
 0x590   :  { %v2007_v60 = vpop.eup %2006  ;;  %s1512_s0 = sshll.u32 %s2231_s12, 4  ;;  %s1513_s0 = int_to_ptr.vmem [resolvable:$true] %s1512_s0 }
 0x591   :  { %v2009_v8 = vpop.eup %2008  ;;  %v1681_v3 = vpack.c.bf16 %v2007_v60, %v2005_v29  ;;  %2018 = vrcp.f32 %v1435_v5  ;;  %s2186_s23 = scalar_lea.vmem %s1513_s0, 512  ;;  %p2191_p13 = scmp.lt.s32.totalorder %s1513_s0, %s1513_s0 }
 0x592   :  { %v1436_v21 = vadd.f32 1.0, %v2009_v8  ;;  %p2187_p12 = scmp.ne.s32.totalorder %s1513_s0, %s2186_s23  ;;  %p2192_p0 = scmp.lt.s32.totalorder %s2186_s23, %s2186_s23 }
 0x593   :  { %1682 = vst [vmem:[#allocation15] sm:$0xff] %v1681_v3  }
 0x594   :  { %2020 = vrcp.f32 %v1436_v21  ;;  %v2011_v11 = vpop.eup %2010  ;;  %p2193_p1 = por %p2192_p0, %p2191_p13 }
 0x595   :  { %v2013_v39 = vpop.eup %2012  ;;  %v1437_v19 = vadd.f32 1.0, %v2011_v11 }
 0x596   :  { %p2194_p2 = pnand %p2193_p1, %p2187_p12 }
 0x597   :  { %2022 = vrcp.f32 %v1437_v19 }
 0x598   :  { %v2015_v40 = vpop.eup %2014 }
 0x599   :  { %v2017_v41 = vpop.eup %2016  ;;  %v1686_v42 = vpack.c.bf16 %v2015_v40, %v2013_v39 }
 0x59a   :  { %v1438_v43 = vadd.f32 1.0, %v2017_v41 }
 0x59b   :  { %1701 = vst [vmem:[#allocation15 + $0x8] sm:$0xff] %v1686_v42  }
 0x59c   :  { %2024 = vrcp.f32 %v1438_v43 }
 0x59e   :  { %v2019_v54 = vpop.eup %2018 }
 0x5a1   :  { %v2021_v44 = vpop.eup %2020 }
 0x5a2   :  { %v1691_v52 = vpack.c.bf16 %v2021_v44, %v2019_v54 }
 0x5a4   :  { %1702 = vst [vmem:[#allocation15 + $0x10] sm:$0xff] %v1691_v52   ;;  %v2023_v57 = vpop.eup %2022 }
 0x5a9   :  { %v2025_v45 = vpop.eup %2024 }
 0x5aa   :  { %v1696_v47 = vpack.c.bf16 %v2025_v45, %v2023_v57 }
 0x5ac   :  { %1703 = vst [vmem:[#allocation15 + $0x18] sm:$0xff] %v1696_v47  }
 0x5ad   :  { %2197 = shalt.err (!%p2194_p2)
}
 0x5ae   :  { %1518 = dma.vmem_to_hbm [thread:$0]  %s1513_s0, 512, %s2541_s13, [#allocation16], %s2220_s30, %s2220_s30, %s2221_s14  }
 0x5af   :  { %2214 = dma.done.wait [#allocation4], 512  }
 0x5b0   :  { %2215 = vsyncadd [#allocation4], 4294966784 }
 0x5b1   :  { %2216 = dma.done.wait [#allocation16], 512  }
 0x5b2   :  { %2217 = vsyncadd [#allocation16], 4294966784 }
 0x5b3   :  { %1525 = vsyncpa [#allocation3], 1 }
 0x5b4   :  { %1526 = vsyncpa [#allocation6], 1 }
 0x5b5   :  { %1527 = vsyncpa [#allocation9], 1 }
 0x5b6   :  { %1528 = vsyncpa [#allocation12], 1 }
 0x5b7   :  { %1529 = vsyncpa [#allocation4], 1 }
 0x5b8   :  { %1530 = vsyncpa [#allocation16], 1 }

</bundles_post_ra>
